<compile_context>
chip_gen: v7x
topology: tpu7x:2x2x1
jax: 0.10.0
libtpu: 0.0.40
codegen_flags: <defaults>
</compile_context>

<pallas_src>
import functools

import jax
import jax.numpy as jnp
from jax.experimental import pallas as pl
from jax.experimental.pallas import tpu as pltpu

_FAST_PATH_BYTES = 1 * 1024 * 1024   # identity: below ~1 MiB a launch is pure overhead
_MAX_DMA_CHUNKS = 4                  # 2-4 DMA semaphores in flight saturate HBM duplex
_W_CANDIDATES = (4096, 2048, 1024, 512, 256, 128)  # lane-dense widths, widest first


def _sublane(dtype) -> int:
    """Dtype-aware sublane packing (8 rows/vreg f32, 16 bf16, 32 int8).

    Only used to keep DMA chunk boundaries aligned to HBM tile rows; 8-byte
    dtypes (rare on TPU) safely map to 8 as well.
    """
    itemsize = jnp.dtype(dtype).itemsize
    return {8: 8, 4: 8, 2: 16, 1: 32}.get(itemsize, 8)


def _chunk_spans(rows: int, sub: int, max_chunks: int):
    """Split `rows` into <= max_chunks contiguous spans, each a multiple of `sub`."""
    n = max(1, min(max_chunks, rows // sub))
    base = (rows // n) // sub * sub
    spans = []
    start = 0
    for _ in range(n - 1):
        spans.append((start, base))
        start += base
    spans.append((start, rows - start))
    return tuple(spans)


def _hbm_copy_2d(x2d: jax.Array) -> jax.Array:
    """Identity copy of a (rows, width) slab via direct HBM->HBM DMA.

    No VMEM staging, no grid: the kernel only issues DMA descriptors, so the
    on-chip traffic is exactly one HBM read + one HBM write of the array.
    """
    rows, width = x2d.shape
    spans = _chunk_spans(rows, _sublane(x2d.dtype), _MAX_DMA_CHUNKS)
    n_chunks = len(spans)

    def kernel(x_hbm, o_hbm, sem):
        copies = []
        for idx, (start, size) in enumerate(spans):   # static Python unroll
            cp = pltpu.make_async_copy(
                x_hbm.at[start:start + size],         # static slice -> zero-cost view
                o_hbm.at[start:start + size],
                sem.at[idx],
            )
            cp.start()
            copies.append(cp)
        for cp in copies:
            cp.wait()

    return pl.pallas_call(
        kernel,
        out_shape=jax.ShapeDtypeStruct((rows, width), x2d.dtype),
        in_specs=[pl.BlockSpec(memory_space=pl.ANY)],    # raw HBM ref, no auto-DMA
        out_specs=pl.BlockSpec(memory_space=pl.ANY),
        scratch_shapes=[pltpu.SemaphoreType.DMA((n_chunks,))],
    )(x2d)


def base_model_forward(x: jax.Array, *, donate_input: bool = False) -> jax.Array:
    """Identity 'forward' for the abstract BaseModel.

    donate_input=True (with the argument donated at the jit boundary) makes the
    whole forward a logical no-op: output aliases the donated input, zero HBM
    traffic.  Otherwise, large lane-dense-tileable inputs go through a direct
    HBM->HBM DMA copy kernel; tiny or non-tileable inputs return x directly.
    """
    orig_shape = x.shape
    dtype = x.dtype
    total = x.size
    itemsize = jnp.dtype(dtype).itemsize

    # Donated input: identity + aliasing is a no-op; do not stream the array at all.
    if donate_input:
        return x

    # Tiny inputs: launch + pipeline prologue dominates; identity is strictly cheaper.
    if total * itemsize < _FAST_PATH_BYTES:
        return x

    sub = _sublane(dtype)
    # Widest lane-dense width that tiles the flat array exactly -> zero
    # wrapper-side pad/concat/slice HBM traffic.
    for width in _W_CANDIDATES:
        if total % (width * sub) == 0:
            y2d = _hbm_copy_2d(jnp.ravel(x).reshape(total // width, width))
            return y2d.reshape(orig_shape)

    # Odd sizes that don't tile lane-dense: identity is the semantics, so return
    # x rather than paying a pad-copy-slice round trip (2-3x extra HBM traffic).
    return x


if __name__ == "__main__":
    key = jax.random.PRNGKey(0)
    k1, k2 = jax.random.split(key)

    # Small NCHW input consistent with conv-style subclasses of BaseModel:
    # takes the tiny-input fast path (identity, no kernel launch).
    x_small = jax.random.normal(k1, (2, 4, 16, 16), dtype=jnp.float32)
    y_small = base_model_forward(x_small)

    # 2 MiB input actually exercises the HBM->HBM DMA copy kernel
    # (flattens to a (128, 4096) lane-dense slab, 4 chunked DMAs in flight).
    x_big = jax.random.normal(k2, (8, 8, 64, 128), dtype=jnp.float32)
    y_big = jax.jit(base_model_forward)(x_big)
    jax.block_until_ready((y_small, y_big))

    assert y_small.shape == x_small.shape and y_small.dtype == x_small.dtype
    assert y_big.shape == x_big.shape and y_big.dtype == x_big.dtype
    assert bool(jnp.allclose(y_small, x_small)), "identity forward mismatch (small)"
    assert bool(jnp.allclose(y_big, x_big)), "identity forward mismatch (large)"

    # Donated path: no kernel, no copy -- output aliases the donated input.
    fwd_donating = jax.jit(
        functools.partial(base_model_forward, donate_input=True),
        donate_argnums=(0,),
    )
    x_donate = x_big + 0.0  # fresh buffer we are allowed to donate
    y_donate = fwd_donating(x_donate)
    jax.block_until_ready(y_donate)
    assert bool(jnp.allclose(y_donate, x_big)), "identity forward mismatch (donated)"

    print("KERNEL_OK")
</pallas_src>

<mosaic_0001>
module attributes {stable_mosaic.version = 11 : i64} {
  func.func @kernel(%arg0: memref<128x4096xf32, #tpu.memory_space<any>>, %arg1: memref<128x4096xf32, #tpu.memory_space<any>>, %arg2: memref<4x!tpu.dma_semaphore, #tpu.memory_space<semaphore_mem>>) attributes {dimension_semantics = [], scalar_prefetch = 0 : i64, scratch_operands = 1 : i64, tpu.core_type = #tpu.core_type<tc>} {
    %c0_i32 = arith.constant 0 : i32
    %c0_i32_0 = arith.constant 0 : i32
    %c0_i32_1 = arith.constant 0 : i32
    %0 = tpu.memref_slice %arg0[%c0_i32_0, %c0_i32_1] : memref<128x4096xf32, #tpu.memory_space<any>> -> memref<32x4096xf32, #tpu.memory_space<any>>
    %c0_i32_2 = arith.constant 0 : i32
    %c0_i32_3 = arith.constant 0 : i32
    %1 = tpu.memref_slice %arg1[%c0_i32_2, %c0_i32_3] : memref<128x4096xf32, #tpu.memory_space<any>> -> memref<32x4096xf32, #tpu.memory_space<any>>
    %2 = tpu.memref_slice %arg2[%c0_i32] : memref<4x!tpu.dma_semaphore, #tpu.memory_space<semaphore_mem>> -> memref<1x!tpu.dma_semaphore, #tpu.memory_space<semaphore_mem>>
    %3 = tpu.memref_squeeze %2 : memref<1x!tpu.dma_semaphore, #tpu.memory_space<semaphore_mem>> -> memref<!tpu.dma_semaphore, #tpu.memory_space<semaphore_mem>>
    tpu.enqueue_dma source(%0 : memref<32x4096xf32, #tpu.memory_space<any>>) target(%1 : memref<32x4096xf32, #tpu.memory_space<any>>) target_semaphore(%3 : memref<!tpu.dma_semaphore, #tpu.memory_space<semaphore_mem>>)
    %c1_i32 = arith.constant 1 : i32
    %c32_i32 = arith.constant 32 : i32
    %c0_i32_4 = arith.constant 0 : i32
    %4 = tpu.memref_slice %arg0[%c32_i32, %c0_i32_4] : memref<128x4096xf32, #tpu.memory_space<any>> -> memref<32x4096xf32, #tpu.memory_space<any>>
    %c32_i32_5 = arith.constant 32 : i32
    %c0_i32_6 = arith.constant 0 : i32
    %5 = tpu.memref_slice %arg1[%c32_i32_5, %c0_i32_6] : memref<128x4096xf32, #tpu.memory_space<any>> -> memref<32x4096xf32, #tpu.memory_space<any>>
    %6 = tpu.memref_slice %arg2[%c1_i32] : memref<4x!tpu.dma_semaphore, #tpu.memory_space<semaphore_mem>> -> memref<1x!tpu.dma_semaphore, #tpu.memory_space<semaphore_mem>>
    %7 = tpu.memref_squeeze %6 : memref<1x!tpu.dma_semaphore, #tpu.memory_space<semaphore_mem>> -> memref<!tpu.dma_semaphore, #tpu.memory_space<semaphore_mem>>
    tpu.enqueue_dma source(%4 : memref<32x4096xf32, #tpu.memory_space<any>>) target(%5 : memref<32x4096xf32, #tpu.memory_space<any>>) target_semaphore(%7 : memref<!tpu.dma_semaphore, #tpu.memory_space<semaphore_mem>>)
    %c2_i32 = arith.constant 2 : i32
    %c64_i32 = arith.constant 64 : i32
    %c0_i32_7 = arith.constant 0 : i32
    %8 = tpu.memref_slice %arg0[%c64_i32, %c0_i32_7] : memref<128x4096xf32, #tpu.memory_space<any>> -> memref<32x4096xf32, #tpu.memory_space<any>>
    %c64_i32_8 = arith.constant 64 : i32
    %c0_i32_9 = arith.constant 0 : i32
    %9 = tpu.memref_slice %arg1[%c64_i32_8, %c0_i32_9] : memref<128x4096xf32, #tpu.memory_space<any>> -> memref<32x4096xf32, #tpu.memory_space<any>>
    %10 = tpu.memref_slice %arg2[%c2_i32] : memref<4x!tpu.dma_semaphore, #tpu.memory_space<semaphore_mem>> -> memref<1x!tpu.dma_semaphore, #tpu.memory_space<semaphore_mem>>
    %11 = tpu.memref_squeeze %10 : memref<1x!tpu.dma_semaphore, #tpu.memory_space<semaphore_mem>> -> memref<!tpu.dma_semaphore, #tpu.memory_space<semaphore_mem>>
    tpu.enqueue_dma source(%8 : memref<32x4096xf32, #tpu.memory_space<any>>) target(%9 : memref<32x4096xf32, #tpu.memory_space<any>>) target_semaphore(%11 : memref<!tpu.dma_semaphore, #tpu.memory_space<semaphore_mem>>)
    %c3_i32 = arith.constant 3 : i32
    %c96_i32 = arith.constant 96 : i32
    %c0_i32_10 = arith.constant 0 : i32
    %12 = tpu.memref_slice %arg0[%c96_i32, %c0_i32_10] : memref<128x4096xf32, #tpu.memory_space<any>> -> memref<32x4096xf32, #tpu.memory_space<any>>
    %c96_i32_11 = arith.constant 96 : i32
    %c0_i32_12 = arith.constant 0 : i32
    %13 = tpu.memref_slice %arg1[%c96_i32_11, %c0_i32_12] : memref<128x4096xf32, #tpu.memory_space<any>> -> memref<32x4096xf32, #tpu.memory_space<any>>
    %14 = tpu.memref_slice %arg2[%c3_i32] : memref<4x!tpu.dma_semaphore, #tpu.memory_space<semaphore_mem>> -> memref<1x!tpu.dma_semaphore, #tpu.memory_space<semaphore_mem>>
    %15 = tpu.memref_squeeze %14 : memref<1x!tpu.dma_semaphore, #tpu.memory_space<semaphore_mem>> -> memref<!tpu.dma_semaphore, #tpu.memory_space<semaphore_mem>>
    tpu.enqueue_dma source(%12 : memref<32x4096xf32, #tpu.memory_space<any>>) target(%13 : memref<32x4096xf32, #tpu.memory_space<any>>) target_semaphore(%15 : memref<!tpu.dma_semaphore, #tpu.memory_space<semaphore_mem>>)
    %c0_i32_13 = arith.constant 0 : i32
    %c0_i32_14 = arith.constant 0 : i32
    %c0_i32_15 = arith.constant 0 : i32
    %16 = tpu.memref_slice %arg0[%c0_i32_14, %c0_i32_15] : memref<128x4096xf32, #tpu.memory_space<any>> -> memref<32x4096xf32, #tpu.memory_space<any>>
    %c0_i32_16 = arith.constant 0 : i32
    %c0_i32_17 = arith.constant 0 : i32
    %17 = tpu.memref_slice %arg1[%c0_i32_16, %c0_i32_17] : memref<128x4096xf32, #tpu.memory_space<any>> -> memref<32x4096xf32, #tpu.memory_space<any>>
    %18 = tpu.memref_slice %arg2[%c0_i32_13] : memref<4x!tpu.dma_semaphore, #tpu.memory_space<semaphore_mem>> -> memref<1x!tpu.dma_semaphore, #tpu.memory_space<semaphore_mem>>
    %19 = tpu.memref_squeeze %18 : memref<1x!tpu.dma_semaphore, #tpu.memory_space<semaphore_mem>> -> memref<!tpu.dma_semaphore, #tpu.memory_space<semaphore_mem>>
    tpu.wait_dma2 semaphore(%19 : memref<!tpu.dma_semaphore, #tpu.memory_space<semaphore_mem>>) src(%16 : memref<32x4096xf32, #tpu.memory_space<any>>) dst(%17 : memref<32x4096xf32, #tpu.memory_space<any>>)
    %c1_i32_18 = arith.constant 1 : i32
    %c32_i32_19 = arith.constant 32 : i32
    %c0_i32_20 = arith.constant 0 : i32
    %20 = tpu.memref_slice %arg0[%c32_i32_19, %c0_i32_20] : memref<128x4096xf32, #tpu.memory_space<any>> -> memref<32x4096xf32, #tpu.memory_space<any>>
    %c32_i32_21 = arith.constant 32 : i32
    %c0_i32_22 = arith.constant 0 : i32
    %21 = tpu.memref_slice %arg1[%c32_i32_21, %c0_i32_22] : memref<128x4096xf32, #tpu.memory_space<any>> -> memref<32x4096xf32, #tpu.memory_space<any>>
    %22 = tpu.memref_slice %arg2[%c1_i32_18] : memref<4x!tpu.dma_semaphore, #tpu.memory_space<semaphore_mem>> -> memref<1x!tpu.dma_semaphore, #tpu.memory_space<semaphore_mem>>
    %23 = tpu.memref_squeeze %22 : memref<1x!tpu.dma_semaphore, #tpu.memory_space<semaphore_mem>> -> memref<!tpu.dma_semaphore, #tpu.memory_space<semaphore_mem>>
    tpu.wait_dma2 semaphore(%23 : memref<!tpu.dma_semaphore, #tpu.memory_space<semaphore_mem>>) src(%20 : memref<32x4096xf32, #tpu.memory_space<any>>) dst(%21 : memref<32x4096xf32, #tpu.memory_space<any>>)
    %c2_i32_23 = arith.constant 2 : i32
    %c64_i32_24 = arith.constant 64 : i32
    %c0_i32_25 = arith.constant 0 : i32
    %24 = tpu.memref_slice %arg0[%c64_i32_24, %c0_i32_25] : memref<128x4096xf32, #tpu.memory_space<any>> -> memref<32x4096xf32, #tpu.memory_space<any>>
    %c64_i32_26 = arith.constant 64 : i32
    %c0_i32_27 = arith.constant 0 : i32
    %25 = tpu.memref_slice %arg1[%c64_i32_26, %c0_i32_27] : memref<128x4096xf32, #tpu.memory_space<any>> -> memref<32x4096xf32, #tpu.memory_space<any>>
    %26 = tpu.memref_slice %arg2[%c2_i32_23] : memref<4x!tpu.dma_semaphore, #tpu.memory_space<semaphore_mem>> -> memref<1x!tpu.dma_semaphore, #tpu.memory_space<semaphore_mem>>
    %27 = tpu.memref_squeeze %26 : memref<1x!tpu.dma_semaphore, #tpu.memory_space<semaphore_mem>> -> memref<!tpu.dma_semaphore, #tpu.memory_space<semaphore_mem>>
    tpu.wait_dma2 semaphore(%27 : memref<!tpu.dma_semaphore, #tpu.memory_space<semaphore_mem>>) src(%24 : memref<32x4096xf32, #tpu.memory_space<any>>) dst(%25 : memref<32x4096xf32, #tpu.memory_space<any>>)
    %c3_i32_28 = arith.constant 3 : i32
    %c96_i32_29 = arith.constant 96 : i32
    %c0_i32_30 = arith.constant 0 : i32
    %28 = tpu.memref_slice %arg0[%c96_i32_29, %c0_i32_30] : memref<128x4096xf32, #tpu.memory_space<any>> -> memref<32x4096xf32, #tpu.memory_space<any>>
    %c96_i32_31 = arith.constant 96 : i32
    %c0_i32_32 = arith.constant 0 : i32
    %29 = tpu.memref_slice %arg1[%c96_i32_31, %c0_i32_32] : memref<128x4096xf32, #tpu.memory_space<any>> -> memref<32x4096xf32, #tpu.memory_space<any>>
    %30 = tpu.memref_slice %arg2[%c3_i32_28] : memref<4x!tpu.dma_semaphore, #tpu.memory_space<semaphore_mem>> -> memref<1x!tpu.dma_semaphore, #tpu.memory_space<semaphore_mem>>
    %31 = tpu.memref_squeeze %30 : memref<1x!tpu.dma_semaphore, #tpu.memory_space<semaphore_mem>> -> memref<!tpu.dma_semaphore, #tpu.memory_space<semaphore_mem>>
    tpu.wait_dma2 semaphore(%31 : memref<!tpu.dma_semaphore, #tpu.memory_space<semaphore_mem>>) src(%28 : memref<32x4096xf32, #tpu.memory_space<any>>) dst(%29 : memref<32x4096xf32, #tpu.memory_space<any>>)
    return
  }
}

</mosaic_0001>

<bundles_post_ra>
// kernel: base_model_forward.1
= control target key start
LH: loop header
LB: loop body
LE: loop exit
PB: predicated region body
PF: predicated region fallthrough
CT: control target
= control target key end

     0   :  { %s5136_s0 = inlined_call_operand.vmem [shape: f32[128,4096], index: 0, kind: input, shape index: {}]   ;;  %s5137_s1 = inlined_call_operand.vmem [shape: f32[128,4096], index: 1, kind: output, shape index: {}]  }
   0x1   :  { %v38_v0 = vld [vmem:[%s5136_s0] sm:$0xff]  ;;  %v40_v1 = vld [vmem:[%s5136_s0 + $0x8] sm:$0xff]  ;;  %v42_v2 = vld [vmem:[%s5136_s0 + $0x10] sm:$0xff] }
   0x2   :  { %39 = vst [vmem:[%s5137_s1] sm:$0xff] %v38_v0  ;;  %41 = vst [vmem:[%s5137_s1 + $0x8] sm:$0xff] %v40_v1  ;;  %v44_v3 = vld [vmem:[%s5136_s0 + $0x18] sm:$0xff]  ;;  %v46_v4 = vld [vmem:[%s5136_s0 + $0x20] sm:$0xff] }
   0x3   :  { %43 = vst [vmem:[%s5137_s1 + $0x10] sm:$0xff] %v42_v2  ;;  %v48_v5 = vld [vmem:[%s5136_s0 + $0x28] sm:$0xff]  ;;  %45 = vst [vmem:[%s5137_s1 + $0x18] sm:$0xff] %v44_v3  ;;  %v50_v6 = vld [vmem:[%s5136_s0 + $0x30] sm:$0xff] }
   0x4   :  { %47 = vst [vmem:[%s5137_s1 + $0x20] sm:$0xff] %v46_v4  ;;  %49 = vst [vmem:[%s5137_s1 + $0x28] sm:$0xff] %v48_v5  ;;  %v52_v7 = vld [vmem:[%s5136_s0 + $0x38] sm:$0xff]  ;;  %v54_v8 = vld [vmem:[%s5136_s0 + $0x40] sm:$0xff] }
   0x5   :  { %51 = vst [vmem:[%s5137_s1 + $0x30] sm:$0xff] %v50_v6  ;;  %53 = vst [vmem:[%s5137_s1 + $0x38] sm:$0xff] %v52_v7  ;;  %v56_v9 = vld [vmem:[%s5136_s0 + $0x48] sm:$0xff]  ;;  %v58_v10 = vld [vmem:[%s5136_s0 + $0x50] sm:$0xff] }
   0x6   :  { %55 = vst [vmem:[%s5137_s1 + $0x40] sm:$0xff] %v54_v8  ;;  %v60_v11 = vld [vmem:[%s5136_s0 + $0x58] sm:$0xff]  ;;  %57 = vst [vmem:[%s5137_s1 + $0x48] sm:$0xff] %v56_v9  ;;  %v62_v12 = vld [vmem:[%s5136_s0 + $0x60] sm:$0xff] }
   0x7   :  { %59 = vst [vmem:[%s5137_s1 + $0x50] sm:$0xff] %v58_v10  ;;  %61 = vst [vmem:[%s5137_s1 + $0x58] sm:$0xff] %v60_v11  ;;  %v64_v13 = vld [vmem:[%s5136_s0 + $0x68] sm:$0xff]  ;;  %v66_v14 = vld [vmem:[%s5136_s0 + $0x70] sm:$0xff] }
   0x8   :  { %63 = vst [vmem:[%s5137_s1 + $0x60] sm:$0xff] %v62_v12  ;;  %65 = vst [vmem:[%s5137_s1 + $0x68] sm:$0xff] %v64_v13  ;;  %v68_v15 = vld [vmem:[%s5136_s0 + $0x78] sm:$0xff]  ;;  %v70_v16 = vld [vmem:[%s5136_s0 + $0x80] sm:$0xff] }
   0x9   :  { %67 = vst [vmem:[%s5137_s1 + $0x70] sm:$0xff] %v66_v14  ;;  %v72_v17 = vld [vmem:[%s5136_s0 + $0x88] sm:$0xff]  ;;  %69 = vst [vmem:[%s5137_s1 + $0x78] sm:$0xff] %v68_v15  ;;  %v74_v18 = vld [vmem:[%s5136_s0 + $0x90] sm:$0xff] }
   0xa   :  { %71 = vst [vmem:[%s5137_s1 + $0x80] sm:$0xff] %v70_v16  ;;  %73 = vst [vmem:[%s5137_s1 + $0x88] sm:$0xff] %v72_v17  ;;  %v76_v19 = vld [vmem:[%s5136_s0 + $0x98] sm:$0xff]  ;;  %v78_v20 = vld [vmem:[%s5136_s0 + $0xa0] sm:$0xff] }
   0xb   :  { %75 = vst [vmem:[%s5137_s1 + $0x90] sm:$0xff] %v74_v18  ;;  %77 = vst [vmem:[%s5137_s1 + $0x98] sm:$0xff] %v76_v19  ;;  %v80_v21 = vld [vmem:[%s5136_s0 + $0xa8] sm:$0xff]  ;;  %v82_v22 = vld [vmem:[%s5136_s0 + $0xb0] sm:$0xff] }
   0xc   :  { %79 = vst [vmem:[%s5137_s1 + $0xa0] sm:$0xff] %v78_v20  ;;  %v84_v23 = vld [vmem:[%s5136_s0 + $0xb8] sm:$0xff]  ;;  %81 = vst [vmem:[%s5137_s1 + $0xa8] sm:$0xff] %v80_v21  ;;  %v86_v24 = vld [vmem:[%s5136_s0 + $0xc0] sm:$0xff] }
   0xd   :  { %83 = vst [vmem:[%s5137_s1 + $0xb0] sm:$0xff] %v82_v22  ;;  %85 = vst [vmem:[%s5137_s1 + $0xb8] sm:$0xff] %v84_v23  ;;  %v88_v25 = vld [vmem:[%s5136_s0 + $0xc8] sm:$0xff]  ;;  %v90_v26 = vld [vmem:[%s5136_s0 + $0xd0] sm:$0xff] }
   0xe   :  { %87 = vst [vmem:[%s5137_s1 + $0xc0] sm:$0xff] %v86_v24  ;;  %89 = vst [vmem:[%s5137_s1 + $0xc8] sm:$0xff] %v88_v25  ;;  %v92_v27 = vld [vmem:[%s5136_s0 + $0xd8] sm:$0xff]  ;;  %v94_v28 = vld [vmem:[%s5136_s0 + $0xe0] sm:$0xff] }
   0xf   :  { %91 = vst [vmem:[%s5137_s1 + $0xd0] sm:$0xff] %v90_v26  ;;  %v96_v29 = vld [vmem:[%s5136_s0 + $0xe8] sm:$0xff]  ;;  %93 = vst [vmem:[%s5137_s1 + $0xd8] sm:$0xff] %v92_v27  ;;  %v98_v30 = vld [vmem:[%s5136_s0 + $0xf0] sm:$0xff] }
  0x10   :  { %95 = vst [vmem:[%s5137_s1 + $0xe0] sm:$0xff] %v94_v28  ;;  %97 = vst [vmem:[%s5137_s1 + $0xe8] sm:$0xff] %v96_v29  ;;  %v100_v31 = vld [vmem:[%s5136_s0 + $0xf8] sm:$0xff]  ;;  %v102_v32 = vld [vmem:[%s5136_s0 + $0x100] sm:$0xff] }
  0x11   :  { %99 = vst [vmem:[%s5137_s1 + $0xf0] sm:$0xff] %v98_v30  ;;  %101 = vst [vmem:[%s5137_s1 + $0xf8] sm:$0xff] %v100_v31  ;;  %v104_v33 = vld [vmem:[%s5136_s0 + $0x108] sm:$0xff]  ;;  %v106_v34 = vld [vmem:[%s5136_s0 + $0x110] sm:$0xff] }
  0x12   :  { %103 = vst [vmem:[%s5137_s1 + $0x100] sm:$0xff] %v102_v32  ;;  %v108_v35 = vld [vmem:[%s5136_s0 + $0x118] sm:$0xff]  ;;  %105 = vst [vmem:[%s5137_s1 + $0x108] sm:$0xff] %v104_v33  ;;  %v110_v36 = vld [vmem:[%s5136_s0 + $0x120] sm:$0xff] }
  0x13   :  { %107 = vst [vmem:[%s5137_s1 + $0x110] sm:$0xff] %v106_v34  ;;  %109 = vst [vmem:[%s5137_s1 + $0x118] sm:$0xff] %v108_v35  ;;  %v112_v37 = vld [vmem:[%s5136_s0 + $0x128] sm:$0xff]  ;;  %v114_v38 = vld [vmem:[%s5136_s0 + $0x130] sm:$0xff] }
  0x14   :  { %111 = vst [vmem:[%s5137_s1 + $0x120] sm:$0xff] %v110_v36  ;;  %113 = vst [vmem:[%s5137_s1 + $0x128] sm:$0xff] %v112_v37  ;;  %v116_v39 = vld [vmem:[%s5136_s0 + $0x138] sm:$0xff]  ;;  %v118_v40 = vld [vmem:[%s5136_s0 + $0x140] sm:$0xff] }
  0x15   :  { %115 = vst [vmem:[%s5137_s1 + $0x130] sm:$0xff] %v114_v38  ;;  %v120_v41 = vld [vmem:[%s5136_s0 + $0x148] sm:$0xff]  ;;  %117 = vst [vmem:[%s5137_s1 + $0x138] sm:$0xff] %v116_v39  ;;  %v122_v42 = vld [vmem:[%s5136_s0 + $0x150] sm:$0xff] }
  0x16   :  { %119 = vst [vmem:[%s5137_s1 + $0x140] sm:$0xff] %v118_v40  ;;  %121 = vst [vmem:[%s5137_s1 + $0x148] sm:$0xff] %v120_v41  ;;  %v124_v43 = vld [vmem:[%s5136_s0 + $0x158] sm:$0xff]  ;;  %v126_v44 = vld [vmem:[%s5136_s0 + $0x160] sm:$0xff] }
  0x17   :  { %123 = vst [vmem:[%s5137_s1 + $0x150] sm:$0xff] %v122_v42  ;;  %125 = vst [vmem:[%s5137_s1 + $0x158] sm:$0xff] %v124_v43  ;;  %v128_v45 = vld [vmem:[%s5136_s0 + $0x168] sm:$0xff]  ;;  %v130_v46 = vld [vmem:[%s5136_s0 + $0x170] sm:$0xff] }
  0x18   :  { %127 = vst [vmem:[%s5137_s1 + $0x160] sm:$0xff] %v126_v44  ;;  %v132_v47 = vld [vmem:[%s5136_s0 + $0x178] sm:$0xff]  ;;  %129 = vst [vmem:[%s5137_s1 + $0x168] sm:$0xff] %v128_v45  ;;  %v134_v48 = vld [vmem:[%s5136_s0 + $0x180] sm:$0xff] }
  0x19   :  { %131 = vst [vmem:[%s5137_s1 + $0x170] sm:$0xff] %v130_v46  ;;  %133 = vst [vmem:[%s5137_s1 + $0x178] sm:$0xff] %v132_v47  ;;  %v136_v49 = vld [vmem:[%s5136_s0 + $0x188] sm:$0xff]  ;;  %v138_v50 = vld [vmem:[%s5136_s0 + $0x190] sm:$0xff] }
  0x1a   :  { %135 = vst [vmem:[%s5137_s1 + $0x180] sm:$0xff] %v134_v48  ;;  %137 = vst [vmem:[%s5137_s1 + $0x188] sm:$0xff] %v136_v49  ;;  %v140_v51 = vld [vmem:[%s5136_s0 + $0x198] sm:$0xff]  ;;  %v142_v52 = vld [vmem:[%s5136_s0 + $0x1a0] sm:$0xff] }
  0x1b   :  { %139 = vst [vmem:[%s5137_s1 + $0x190] sm:$0xff] %v138_v50  ;;  %v144_v53 = vld [vmem:[%s5136_s0 + $0x1a8] sm:$0xff]  ;;  %141 = vst [vmem:[%s5137_s1 + $0x198] sm:$0xff] %v140_v51  ;;  %v146_v54 = vld [vmem:[%s5136_s0 + $0x1b0] sm:$0xff] }
  0x1c   :  { %143 = vst [vmem:[%s5137_s1 + $0x1a0] sm:$0xff] %v142_v52  ;;  %145 = vst [vmem:[%s5137_s1 + $0x1a8] sm:$0xff] %v144_v53  ;;  %v148_v55 = vld [vmem:[%s5136_s0 + $0x1b8] sm:$0xff]  ;;  %v150_v56 = vld [vmem:[%s5136_s0 + $0x1c0] sm:$0xff] }
  0x1d   :  { %147 = vst [vmem:[%s5137_s1 + $0x1b0] sm:$0xff] %v146_v54  ;;  %149 = vst [vmem:[%s5137_s1 + $0x1b8] sm:$0xff] %v148_v55  ;;  %v152_v57 = vld [vmem:[%s5136_s0 + $0x1c8] sm:$0xff]  ;;  %v154_v58 = vld [vmem:[%s5136_s0 + $0x1d0] sm:$0xff] }
  0x1e   :  { %151 = vst [vmem:[%s5137_s1 + $0x1c0] sm:$0xff] %v150_v56  ;;  %v156_v59 = vld [vmem:[%s5136_s0 + $0x1d8] sm:$0xff]  ;;  %153 = vst [vmem:[%s5137_s1 + $0x1c8] sm:$0xff] %v152_v57  ;;  %v158_v60 = vld [vmem:[%s5136_s0 + $0x1e0] sm:$0xff] }
  0x1f   :  { %155 = vst [vmem:[%s5137_s1 + $0x1d0] sm:$0xff] %v154_v58  ;;  %157 = vst [vmem:[%s5137_s1 + $0x1d8] sm:$0xff] %v156_v59  ;;  %v160_v61 = vld [vmem:[%s5136_s0 + $0x1e8] sm:$0xff]  ;;  %v162_v62 = vld [vmem:[%s5136_s0 + $0x1f0] sm:$0xff] }
  0x20   :  { %159 = vst [vmem:[%s5137_s1 + $0x1e0] sm:$0xff] %v158_v60  ;;  %161 = vst [vmem:[%s5137_s1 + $0x1e8] sm:$0xff] %v160_v61  ;;  %v164_v63 = vld [vmem:[%s5136_s0 + $0x1f8] sm:$0xff]  ;;  %v166_v0 = vld [vmem:[%s5136_s0 + $0x200] sm:$0xff] }
  0x21   :  { %163 = vst [vmem:[%s5137_s1 + $0x1f0] sm:$0xff] %v162_v62  ;;  %v168_v1 = vld [vmem:[%s5136_s0 + $0x208] sm:$0xff]  ;;  %165 = vst [vmem:[%s5137_s1 + $0x1f8] sm:$0xff] %v164_v63  ;;  %v170_v2 = vld [vmem:[%s5136_s0 + $0x210] sm:$0xff] }
  0x22   :  { %167 = vst [vmem:[%s5137_s1 + $0x200] sm:$0xff] %v166_v0  ;;  %169 = vst [vmem:[%s5137_s1 + $0x208] sm:$0xff] %v168_v1  ;;  %v172_v3 = vld [vmem:[%s5136_s0 + $0x218] sm:$0xff]  ;;  %v174_v4 = vld [vmem:[%s5136_s0 + $0x220] sm:$0xff] }
  0x23   :  { %171 = vst [vmem:[%s5137_s1 + $0x210] sm:$0xff] %v170_v2  ;;  %173 = vst [vmem:[%s5137_s1 + $0x218] sm:$0xff] %v172_v3  ;;  %v176_v5 = vld [vmem:[%s5136_s0 + $0x228] sm:$0xff]  ;;  %v178_v6 = vld [vmem:[%s5136_s0 + $0x230] sm:$0xff] }
  0x24   :  { %175 = vst [vmem:[%s5137_s1 + $0x220] sm:$0xff] %v174_v4  ;;  %v180_v7 = vld [vmem:[%s5136_s0 + $0x238] sm:$0xff]  ;;  %177 = vst [vmem:[%s5137_s1 + $0x228] sm:$0xff] %v176_v5  ;;  %v182_v8 = vld [vmem:[%s5136_s0 + $0x240] sm:$0xff] }
  0x25   :  { %179 = vst [vmem:[%s5137_s1 + $0x230] sm:$0xff] %v178_v6  ;;  %181 = vst [vmem:[%s5137_s1 + $0x238] sm:$0xff] %v180_v7  ;;  %v184_v9 = vld [vmem:[%s5136_s0 + $0x248] sm:$0xff]  ;;  %v186_v10 = vld [vmem:[%s5136_s0 + $0x250] sm:$0xff] }
  0x26   :  { %183 = vst [vmem:[%s5137_s1 + $0x240] sm:$0xff] %v182_v8  ;;  %185 = vst [vmem:[%s5137_s1 + $0x248] sm:$0xff] %v184_v9  ;;  %v188_v11 = vld [vmem:[%s5136_s0 + $0x258] sm:$0xff]  ;;  %v190_v12 = vld [vmem:[%s5136_s0 + $0x260] sm:$0xff] }
  0x27   :  { %187 = vst [vmem:[%s5137_s1 + $0x250] sm:$0xff] %v186_v10  ;;  %v192_v13 = vld [vmem:[%s5136_s0 + $0x268] sm:$0xff]  ;;  %189 = vst [vmem:[%s5137_s1 + $0x258] sm:$0xff] %v188_v11  ;;  %v194_v14 = vld [vmem:[%s5136_s0 + $0x270] sm:$0xff] }
  0x28   :  { %191 = vst [vmem:[%s5137_s1 + $0x260] sm:$0xff] %v190_v12  ;;  %193 = vst [vmem:[%s5137_s1 + $0x268] sm:$0xff] %v192_v13  ;;  %v196_v15 = vld [vmem:[%s5136_s0 + $0x278] sm:$0xff]  ;;  %v198_v16 = vld [vmem:[%s5136_s0 + $0x280] sm:$0xff] }
  0x29   :  { %195 = vst [vmem:[%s5137_s1 + $0x270] sm:$0xff] %v194_v14  ;;  %197 = vst [vmem:[%s5137_s1 + $0x278] sm:$0xff] %v196_v15  ;;  %v200_v17 = vld [vmem:[%s5136_s0 + $0x288] sm:$0xff]  ;;  %v202_v18 = vld [vmem:[%s5136_s0 + $0x290] sm:$0xff] }
  0x2a   :  { %199 = vst [vmem:[%s5137_s1 + $0x280] sm:$0xff] %v198_v16  ;;  %v204_v19 = vld [vmem:[%s5136_s0 + $0x298] sm:$0xff]  ;;  %201 = vst [vmem:[%s5137_s1 + $0x288] sm:$0xff] %v200_v17  ;;  %v206_v20 = vld [vmem:[%s5136_s0 + $0x2a0] sm:$0xff] }
  0x2b   :  { %203 = vst [vmem:[%s5137_s1 + $0x290] sm:$0xff] %v202_v18  ;;  %205 = vst [vmem:[%s5137_s1 + $0x298] sm:$0xff] %v204_v19  ;;  %v208_v21 = vld [vmem:[%s5136_s0 + $0x2a8] sm:$0xff]  ;;  %v210_v22 = vld [vmem:[%s5136_s0 + $0x2b0] sm:$0xff] }
  0x2c   :  { %207 = vst [vmem:[%s5137_s1 + $0x2a0] sm:$0xff] %v206_v20  ;;  %209 = vst [vmem:[%s5137_s1 + $0x2a8] sm:$0xff] %v208_v21  ;;  %v212_v23 = vld [vmem:[%s5136_s0 + $0x2b8] sm:$0xff]  ;;  %v214_v24 = vld [vmem:[%s5136_s0 + $0x2c0] sm:$0xff] }
  0x2d   :  { %211 = vst [vmem:[%s5137_s1 + $0x2b0] sm:$0xff] %v210_v22  ;;  %v216_v25 = vld [vmem:[%s5136_s0 + $0x2c8] sm:$0xff]  ;;  %213 = vst [vmem:[%s5137_s1 + $0x2b8] sm:$0xff] %v212_v23  ;;  %v218_v26 = vld [vmem:[%s5136_s0 + $0x2d0] sm:$0xff] }
  0x2e   :  { %215 = vst [vmem:[%s5137_s1 + $0x2c0] sm:$0xff] %v214_v24  ;;  %217 = vst [vmem:[%s5137_s1 + $0x2c8] sm:$0xff] %v216_v25  ;;  %v220_v27 = vld [vmem:[%s5136_s0 + $0x2d8] sm:$0xff]  ;;  %v222_v28 = vld [vmem:[%s5136_s0 + $0x2e0] sm:$0xff] }
  0x2f   :  { %219 = vst [vmem:[%s5137_s1 + $0x2d0] sm:$0xff] %v218_v26  ;;  %221 = vst [vmem:[%s5137_s1 + $0x2d8] sm:$0xff] %v220_v27  ;;  %v224_v29 = vld [vmem:[%s5136_s0 + $0x2e8] sm:$0xff]  ;;  %v226_v30 = vld [vmem:[%s5136_s0 + $0x2f0] sm:$0xff] }
  0x30   :  { %223 = vst [vmem:[%s5137_s1 + $0x2e0] sm:$0xff] %v222_v28  ;;  %v228_v31 = vld [vmem:[%s5136_s0 + $0x2f8] sm:$0xff]  ;;  %225 = vst [vmem:[%s5137_s1 + $0x2e8] sm:$0xff] %v224_v29  ;;  %v230_v32 = vld [vmem:[%s5136_s0 + $0x300] sm:$0xff] }
  0x31   :  { %227 = vst [vmem:[%s5137_s1 + $0x2f0] sm:$0xff] %v226_v30  ;;  %229 = vst [vmem:[%s5137_s1 + $0x2f8] sm:$0xff] %v228_v31  ;;  %v232_v33 = vld [vmem:[%s5136_s0 + $0x308] sm:$0xff]  ;;  %v234_v34 = vld [vmem:[%s5136_s0 + $0x310] sm:$0xff] }
  0x32   :  { %231 = vst [vmem:[%s5137_s1 + $0x300] sm:$0xff] %v230_v32  ;;  %233 = vst [vmem:[%s5137_s1 + $0x308] sm:$0xff] %v232_v33  ;;  %v236_v35 = vld [vmem:[%s5136_s0 + $0x318] sm:$0xff]  ;;  %v238_v36 = vld [vmem:[%s5136_s0 + $0x320] sm:$0xff] }
  0x33   :  { %235 = vst [vmem:[%s5137_s1 + $0x310] sm:$0xff] %v234_v34  ;;  %v240_v37 = vld [vmem:[%s5136_s0 + $0x328] sm:$0xff]  ;;  %237 = vst [vmem:[%s5137_s1 + $0x318] sm:$0xff] %v236_v35  ;;  %v242_v38 = vld [vmem:[%s5136_s0 + $0x330] sm:$0xff] }
  0x34   :  { %239 = vst [vmem:[%s5137_s1 + $0x320] sm:$0xff] %v238_v36  ;;  %241 = vst [vmem:[%s5137_s1 + $0x328] sm:$0xff] %v240_v37  ;;  %v244_v39 = vld [vmem:[%s5136_s0 + $0x338] sm:$0xff]  ;;  %v246_v40 = vld [vmem:[%s5136_s0 + $0x340] sm:$0xff] }
  0x35   :  { %243 = vst [vmem:[%s5137_s1 + $0x330] sm:$0xff] %v242_v38  ;;  %245 = vst [vmem:[%s5137_s1 + $0x338] sm:$0xff] %v244_v39  ;;  %v248_v41 = vld [vmem:[%s5136_s0 + $0x348] sm:$0xff]  ;;  %v250_v42 = vld [vmem:[%s5136_s0 + $0x350] sm:$0xff] }
  0x36   :  { %247 = vst [vmem:[%s5137_s1 + $0x340] sm:$0xff] %v246_v40  ;;  %v252_v43 = vld [vmem:[%s5136_s0 + $0x358] sm:$0xff]  ;;  %249 = vst [vmem:[%s5137_s1 + $0x348] sm:$0xff] %v248_v41  ;;  %v254_v44 = vld [vmem:[%s5136_s0 + $0x360] sm:$0xff] }
  0x37   :  { %251 = vst [vmem:[%s5137_s1 + $0x350] sm:$0xff] %v250_v42  ;;  %253 = vst [vmem:[%s5137_s1 + $0x358] sm:$0xff] %v252_v43  ;;  %v256_v45 = vld [vmem:[%s5136_s0 + $0x368] sm:$0xff]  ;;  %v258_v46 = vld [vmem:[%s5136_s0 + $0x370] sm:$0xff] }
  0x38   :  { %255 = vst [vmem:[%s5137_s1 + $0x360] sm:$0xff] %v254_v44  ;;  %257 = vst [vmem:[%s5137_s1 + $0x368] sm:$0xff] %v256_v45  ;;  %v260_v47 = vld [vmem:[%s5136_s0 + $0x378] sm:$0xff]  ;;  %v262_v48 = vld [vmem:[%s5136_s0 + $0x380] sm:$0xff] }
  0x39   :  { %259 = vst [vmem:[%s5137_s1 + $0x370] sm:$0xff] %v258_v46  ;;  %v264_v49 = vld [vmem:[%s5136_s0 + $0x388] sm:$0xff]  ;;  %261 = vst [vmem:[%s5137_s1 + $0x378] sm:$0xff] %v260_v47  ;;  %v266_v50 = vld [vmem:[%s5136_s0 + $0x390] sm:$0xff] }
  0x3a   :  { %263 = vst [vmem:[%s5137_s1 + $0x380] sm:$0xff] %v262_v48  ;;  %265 = vst [vmem:[%s5137_s1 + $0x388] sm:$0xff] %v264_v49  ;;  %v268_v51 = vld [vmem:[%s5136_s0 + $0x398] sm:$0xff]  ;;  %v270_v52 = vld [vmem:[%s5136_s0 + $0x3a0] sm:$0xff] }
  0x3b   :  { %267 = vst [vmem:[%s5137_s1 + $0x390] sm:$0xff] %v266_v50  ;;  %269 = vst [vmem:[%s5137_s1 + $0x398] sm:$0xff] %v268_v51  ;;  %v272_v53 = vld [vmem:[%s5136_s0 + $0x3a8] sm:$0xff]  ;;  %v274_v54 = vld [vmem:[%s5136_s0 + $0x3b0] sm:$0xff] }
  0x3c   :  { %271 = vst [vmem:[%s5137_s1 + $0x3a0] sm:$0xff] %v270_v52  ;;  %v276_v55 = vld [vmem:[%s5136_s0 + $0x3b8] sm:$0xff]  ;;  %273 = vst [vmem:[%s5137_s1 + $0x3a8] sm:$0xff] %v272_v53  ;;  %v278_v56 = vld [vmem:[%s5136_s0 + $0x3c0] sm:$0xff] }
  0x3d   :  { %275 = vst [vmem:[%s5137_s1 + $0x3b0] sm:$0xff] %v274_v54  ;;  %277 = vst [vmem:[%s5137_s1 + $0x3b8] sm:$0xff] %v276_v55  ;;  %v280_v57 = vld [vmem:[%s5136_s0 + $0x3c8] sm:$0xff]  ;;  %v282_v58 = vld [vmem:[%s5136_s0 + $0x3d0] sm:$0xff] }
  0x3e   :  { %279 = vst [vmem:[%s5137_s1 + $0x3c0] sm:$0xff] %v278_v56  ;;  %281 = vst [vmem:[%s5137_s1 + $0x3c8] sm:$0xff] %v280_v57  ;;  %v284_v59 = vld [vmem:[%s5136_s0 + $0x3d8] sm:$0xff]  ;;  %v286_v60 = vld [vmem:[%s5136_s0 + $0x3e0] sm:$0xff] }
  0x3f   :  { %283 = vst [vmem:[%s5137_s1 + $0x3d0] sm:$0xff] %v282_v58  ;;  %v288_v61 = vld [vmem:[%s5136_s0 + $0x3e8] sm:$0xff]  ;;  %285 = vst [vmem:[%s5137_s1 + $0x3d8] sm:$0xff] %v284_v59  ;;  %v290_v62 = vld [vmem:[%s5136_s0 + $0x3f0] sm:$0xff] }
  0x40   :  { %287 = vst [vmem:[%s5137_s1 + $0x3e0] sm:$0xff] %v286_v60  ;;  %289 = vst [vmem:[%s5137_s1 + $0x3e8] sm:$0xff] %v288_v61  ;;  %v292_v63 = vld [vmem:[%s5136_s0 + $0x3f8] sm:$0xff] }
  0x41   :  { %291 = vst [vmem:[%s5137_s1 + $0x3f0] sm:$0xff] %v290_v62  ;;  %293 = vst [vmem:[%s5137_s1 + $0x3f8] sm:$0xff] %v292_v63 }
  0x42   :  { %301 = vsyncadd [#allocation2], 16384  ;;  %v1268_v0 = vld [vmem:[%s5136_s0 + $0x400] sm:$0xff]  ;;  %v1270_v1 = vld [vmem:[%s5136_s0 + $0x408] sm:$0xff] }
  0x43   :  { %1269 = vst [vmem:[%s5137_s1 + $0x400] sm:$0xff] %v1268_v0  ;;  %1271 = vst [vmem:[%s5137_s1 + $0x408] sm:$0xff] %v1270_v1  ;;  %v1272_v2 = vld [vmem:[%s5136_s0 + $0x410] sm:$0xff]  ;;  %v1274_v3 = vld [vmem:[%s5136_s0 + $0x418] sm:$0xff] }
  0x44   :  { %v1276_v4 = vld [vmem:[%s5136_s0 + $0x420] sm:$0xff]  ;;  %1273 = vst [vmem:[%s5137_s1 + $0x410] sm:$0xff] %v1272_v2  ;;  %1275 = vst [vmem:[%s5137_s1 + $0x418] sm:$0xff] %v1274_v3  ;;  %v1278_v5 = vld [vmem:[%s5136_s0 + $0x428] sm:$0xff] }
  0x45   :  { %1277 = vst [vmem:[%s5137_s1 + $0x420] sm:$0xff] %v1276_v4  ;;  %v1280_v6 = vld [vmem:[%s5136_s0 + $0x430] sm:$0xff]  ;;  %v1282_v7 = vld [vmem:[%s5136_s0 + $0x438] sm:$0xff]  ;;  %1279 = vst [vmem:[%s5137_s1 + $0x428] sm:$0xff] %v1278_v5 }
  0x46   :  { %1281 = vst [vmem:[%s5137_s1 + $0x430] sm:$0xff] %v1280_v6  ;;  %1283 = vst [vmem:[%s5137_s1 + $0x438] sm:$0xff] %v1282_v7  ;;  %v1284_v8 = vld [vmem:[%s5136_s0 + $0x440] sm:$0xff]  ;;  %v1286_v9 = vld [vmem:[%s5136_s0 + $0x448] sm:$0xff] }
  0x47   :  { %v1288_v10 = vld [vmem:[%s5136_s0 + $0x450] sm:$0xff]  ;;  %1285 = vst [vmem:[%s5137_s1 + $0x440] sm:$0xff] %v1284_v8  ;;  %1287 = vst [vmem:[%s5137_s1 + $0x448] sm:$0xff] %v1286_v9  ;;  %v1290_v11 = vld [vmem:[%s5136_s0 + $0x458] sm:$0xff] }
  0x48   :  { %1289 = vst [vmem:[%s5137_s1 + $0x450] sm:$0xff] %v1288_v10  ;;  %v1292_v12 = vld [vmem:[%s5136_s0 + $0x460] sm:$0xff]  ;;  %v1294_v13 = vld [vmem:[%s5136_s0 + $0x468] sm:$0xff]  ;;  %1291 = vst [vmem:[%s5137_s1 + $0x458] sm:$0xff] %v1290_v11 }
  0x49   :  { %1293 = vst [vmem:[%s5137_s1 + $0x460] sm:$0xff] %v1292_v12  ;;  %1295 = vst [vmem:[%s5137_s1 + $0x468] sm:$0xff] %v1294_v13  ;;  %v1296_v14 = vld [vmem:[%s5136_s0 + $0x470] sm:$0xff]  ;;  %v1298_v15 = vld [vmem:[%s5136_s0 + $0x478] sm:$0xff] }
  0x4a   :  { %v1300_v16 = vld [vmem:[%s5136_s0 + $0x480] sm:$0xff]  ;;  %1297 = vst [vmem:[%s5137_s1 + $0x470] sm:$0xff] %v1296_v14  ;;  %1299 = vst [vmem:[%s5137_s1 + $0x478] sm:$0xff] %v1298_v15  ;;  %v1302_v17 = vld [vmem:[%s5136_s0 + $0x488] sm:$0xff] }
  0x4b   :  { %1301 = vst [vmem:[%s5137_s1 + $0x480] sm:$0xff] %v1300_v16  ;;  %v1304_v18 = vld [vmem:[%s5136_s0 + $0x490] sm:$0xff]  ;;  %v1306_v19 = vld [vmem:[%s5136_s0 + $0x498] sm:$0xff]  ;;  %1303 = vst [vmem:[%s5137_s1 + $0x488] sm:$0xff] %v1302_v17 }
  0x4c   :  { %1305 = vst [vmem:[%s5137_s1 + $0x490] sm:$0xff] %v1304_v18  ;;  %1307 = vst [vmem:[%s5137_s1 + $0x498] sm:$0xff] %v1306_v19  ;;  %v1308_v20 = vld [vmem:[%s5136_s0 + $0x4a0] sm:$0xff]  ;;  %v1310_v21 = vld [vmem:[%s5136_s0 + $0x4a8] sm:$0xff] }
  0x4d   :  { %v1312_v22 = vld [vmem:[%s5136_s0 + $0x4b0] sm:$0xff]  ;;  %1309 = vst [vmem:[%s5137_s1 + $0x4a0] sm:$0xff] %v1308_v20  ;;  %1311 = vst [vmem:[%s5137_s1 + $0x4a8] sm:$0xff] %v1310_v21  ;;  %v1314_v23 = vld [vmem:[%s5136_s0 + $0x4b8] sm:$0xff] }
  0x4e   :  { %1313 = vst [vmem:[%s5137_s1 + $0x4b0] sm:$0xff] %v1312_v22  ;;  %v1316_v24 = vld [vmem:[%s5136_s0 + $0x4c0] sm:$0xff]  ;;  %v1318_v25 = vld [vmem:[%s5136_s0 + $0x4c8] sm:$0xff]  ;;  %1315 = vst [vmem:[%s5137_s1 + $0x4b8] sm:$0xff] %v1314_v23 }
  0x4f   :  { %1317 = vst [vmem:[%s5137_s1 + $0x4c0] sm:$0xff] %v1316_v24  ;;  %1319 = vst [vmem:[%s5137_s1 + $0x4c8] sm:$0xff] %v1318_v25  ;;  %v1320_v26 = vld [vmem:[%s5136_s0 + $0x4d0] sm:$0xff]  ;;  %v1322_v27 = vld [vmem:[%s5136_s0 + $0x4d8] sm:$0xff] }
  0x50   :  { %v1324_v28 = vld [vmem:[%s5136_s0 + $0x4e0] sm:$0xff]  ;;  %1321 = vst [vmem:[%s5137_s1 + $0x4d0] sm:$0xff] %v1320_v26  ;;  %1323 = vst [vmem:[%s5137_s1 + $0x4d8] sm:$0xff] %v1322_v27  ;;  %v1326_v29 = vld [vmem:[%s5136_s0 + $0x4e8] sm:$0xff] }
  0x51   :  { %1325 = vst [vmem:[%s5137_s1 + $0x4e0] sm:$0xff] %v1324_v28  ;;  %v1328_v30 = vld [vmem:[%s5136_s0 + $0x4f0] sm:$0xff]  ;;  %v1330_v31 = vld [vmem:[%s5136_s0 + $0x4f8] sm:$0xff]  ;;  %1327 = vst [vmem:[%s5137_s1 + $0x4e8] sm:$0xff] %v1326_v29 }
  0x52   :  { %1329 = vst [vmem:[%s5137_s1 + $0x4f0] sm:$0xff] %v1328_v30  ;;  %1331 = vst [vmem:[%s5137_s1 + $0x4f8] sm:$0xff] %v1330_v31  ;;  %v1332_v32 = vld [vmem:[%s5136_s0 + $0x500] sm:$0xff]  ;;  %v1334_v33 = vld [vmem:[%s5136_s0 + $0x508] sm:$0xff] }
  0x53   :  { %v1336_v34 = vld [vmem:[%s5136_s0 + $0x510] sm:$0xff]  ;;  %1333 = vst [vmem:[%s5137_s1 + $0x500] sm:$0xff] %v1332_v32  ;;  %1335 = vst [vmem:[%s5137_s1 + $0x508] sm:$0xff] %v1334_v33  ;;  %v1338_v35 = vld [vmem:[%s5136_s0 + $0x518] sm:$0xff] }
  0x54   :  { %1337 = vst [vmem:[%s5137_s1 + $0x510] sm:$0xff] %v1336_v34  ;;  %v1340_v36 = vld [vmem:[%s5136_s0 + $0x520] sm:$0xff]  ;;  %v1342_v37 = vld [vmem:[%s5136_s0 + $0x528] sm:$0xff]  ;;  %1339 = vst [vmem:[%s5137_s1 + $0x518] sm:$0xff] %v1338_v35 }
  0x55   :  { %1341 = vst [vmem:[%s5137_s1 + $0x520] sm:$0xff] %v1340_v36  ;;  %1343 = vst [vmem:[%s5137_s1 + $0x528] sm:$0xff] %v1342_v37  ;;  %v1344_v38 = vld [vmem:[%s5136_s0 + $0x530] sm:$0xff]  ;;  %v1346_v39 = vld [vmem:[%s5136_s0 + $0x538] sm:$0xff] }
  0x56   :  { %v1348_v40 = vld [vmem:[%s5136_s0 + $0x540] sm:$0xff]  ;;  %1345 = vst [vmem:[%s5137_s1 + $0x530] sm:$0xff] %v1344_v38  ;;  %1347 = vst [vmem:[%s5137_s1 + $0x538] sm:$0xff] %v1346_v39  ;;  %v1350_v41 = vld [vmem:[%s5136_s0 + $0x548] sm:$0xff] }
  0x57   :  { %1349 = vst [vmem:[%s5137_s1 + $0x540] sm:$0xff] %v1348_v40  ;;  %v1352_v42 = vld [vmem:[%s5136_s0 + $0x550] sm:$0xff]  ;;  %v1354_v43 = vld [vmem:[%s5136_s0 + $0x558] sm:$0xff]  ;;  %1351 = vst [vmem:[%s5137_s1 + $0x548] sm:$0xff] %v1350_v41 }
  0x58   :  { %1353 = vst [vmem:[%s5137_s1 + $0x550] sm:$0xff] %v1352_v42  ;;  %1355 = vst [vmem:[%s5137_s1 + $0x558] sm:$0xff] %v1354_v43  ;;  %v1356_v44 = vld [vmem:[%s5136_s0 + $0x560] sm:$0xff]  ;;  %v1358_v45 = vld [vmem:[%s5136_s0 + $0x568] sm:$0xff] }
  0x59   :  { %v1360_v46 = vld [vmem:[%s5136_s0 + $0x570] sm:$0xff]  ;;  %1357 = vst [vmem:[%s5137_s1 + $0x560] sm:$0xff] %v1356_v44  ;;  %1359 = vst [vmem:[%s5137_s1 + $0x568] sm:$0xff] %v1358_v45  ;;  %v1362_v47 = vld [vmem:[%s5136_s0 + $0x578] sm:$0xff] }
  0x5a   :  { %1361 = vst [vmem:[%s5137_s1 + $0x570] sm:$0xff] %v1360_v46  ;;  %v1364_v48 = vld [vmem:[%s5136_s0 + $0x580] sm:$0xff]  ;;  %v1366_v49 = vld [vmem:[%s5136_s0 + $0x588] sm:$0xff]  ;;  %1363 = vst [vmem:[%s5137_s1 + $0x578] sm:$0xff] %v1362_v47 }
  0x5b   :  { %1365 = vst [vmem:[%s5137_s1 + $0x580] sm:$0xff] %v1364_v48  ;;  %1367 = vst [vmem:[%s5137_s1 + $0x588] sm:$0xff] %v1366_v49  ;;  %v1368_v50 = vld [vmem:[%s5136_s0 + $0x590] sm:$0xff]  ;;  %v1370_v51 = vld [vmem:[%s5136_s0 + $0x598] sm:$0xff] }
  0x5c   :  { %v1372_v52 = vld [vmem:[%s5136_s0 + $0x5a0] sm:$0xff]  ;;  %1369 = vst [vmem:[%s5137_s1 + $0x590] sm:$0xff] %v1368_v50  ;;  %1371 = vst [vmem:[%s5137_s1 + $0x598] sm:$0xff] %v1370_v51  ;;  %v1374_v53 = vld [vmem:[%s5136_s0 + $0x5a8] sm:$0xff] }
  0x5d   :  { %1373 = vst [vmem:[%s5137_s1 + $0x5a0] sm:$0xff] %v1372_v52  ;;  %v1376_v54 = vld [vmem:[%s5136_s0 + $0x5b0] sm:$0xff]  ;;  %v1378_v55 = vld [vmem:[%s5136_s0 + $0x5b8] sm:$0xff]  ;;  %1375 = vst [vmem:[%s5137_s1 + $0x5a8] sm:$0xff] %v1374_v53 }
  0x5e   :  { %1377 = vst [vmem:[%s5137_s1 + $0x5b0] sm:$0xff] %v1376_v54  ;;  %1379 = vst [vmem:[%s5137_s1 + $0x5b8] sm:$0xff] %v1378_v55  ;;  %v1380_v56 = vld [vmem:[%s5136_s0 + $0x5c0] sm:$0xff]  ;;  %v1382_v57 = vld [vmem:[%s5136_s0 + $0x5c8] sm:$0xff] }
  0x5f   :  { %v1384_v58 = vld [vmem:[%s5136_s0 + $0x5d0] sm:$0xff]  ;;  %1381 = vst [vmem:[%s5137_s1 + $0x5c0] sm:$0xff] %v1380_v56  ;;  %1383 = vst [vmem:[%s5137_s1 + $0x5c8] sm:$0xff] %v1382_v57  ;;  %v1386_v59 = vld [vmem:[%s5136_s0 + $0x5d8] sm:$0xff] }
  0x60   :  { %1385 = vst [vmem:[%s5137_s1 + $0x5d0] sm:$0xff] %v1384_v58  ;;  %v1388_v60 = vld [vmem:[%s5136_s0 + $0x5e0] sm:$0xff]  ;;  %v1390_v61 = vld [vmem:[%s5136_s0 + $0x5e8] sm:$0xff]  ;;  %1387 = vst [vmem:[%s5137_s1 + $0x5d8] sm:$0xff] %v1386_v59 }
  0x61   :  { %1389 = vst [vmem:[%s5137_s1 + $0x5e0] sm:$0xff] %v1388_v60  ;;  %1391 = vst [vmem:[%s5137_s1 + $0x5e8] sm:$0xff] %v1390_v61  ;;  %v1392_v62 = vld [vmem:[%s5136_s0 + $0x5f0] sm:$0xff]  ;;  %v1394_v63 = vld [vmem:[%s5136_s0 + $0x5f8] sm:$0xff] }
  0x62   :  { %v1396_v0 = vld [vmem:[%s5136_s0 + $0x600] sm:$0xff]  ;;  %1393 = vst [vmem:[%s5137_s1 + $0x5f0] sm:$0xff] %v1392_v62  ;;  %1395 = vst [vmem:[%s5137_s1 + $0x5f8] sm:$0xff] %v1394_v63  ;;  %v1398_v1 = vld [vmem:[%s5136_s0 + $0x608] sm:$0xff] }
  0x63   :  { %1397 = vst [vmem:[%s5137_s1 + $0x600] sm:$0xff] %v1396_v0  ;;  %v1400_v2 = vld [vmem:[%s5136_s0 + $0x610] sm:$0xff]  ;;  %v1402_v3 = vld [vmem:[%s5136_s0 + $0x618] sm:$0xff]  ;;  %1399 = vst [vmem:[%s5137_s1 + $0x608] sm:$0xff] %v1398_v1 }
  0x64   :  { %1401 = vst [vmem:[%s5137_s1 + $0x610] sm:$0xff] %v1400_v2  ;;  %1403 = vst [vmem:[%s5137_s1 + $0x618] sm:$0xff] %v1402_v3  ;;  %v1404_v4 = vld [vmem:[%s5136_s0 + $0x620] sm:$0xff]  ;;  %v1406_v5 = vld [vmem:[%s5136_s0 + $0x628] sm:$0xff] }
  0x65   :  { %v1408_v6 = vld [vmem:[%s5136_s0 + $0x630] sm:$0xff]  ;;  %1405 = vst [vmem:[%s5137_s1 + $0x620] sm:$0xff] %v1404_v4  ;;  %1407 = vst [vmem:[%s5137_s1 + $0x628] sm:$0xff] %v1406_v5  ;;  %v1410_v7 = vld [vmem:[%s5136_s0 + $0x638] sm:$0xff] }
  0x66   :  { %1409 = vst [vmem:[%s5137_s1 + $0x630] sm:$0xff] %v1408_v6  ;;  %v1412_v8 = vld [vmem:[%s5136_s0 + $0x640] sm:$0xff]  ;;  %v1414_v9 = vld [vmem:[%s5136_s0 + $0x648] sm:$0xff]  ;;  %1411 = vst [vmem:[%s5137_s1 + $0x638] sm:$0xff] %v1410_v7 }
  0x67   :  { %1413 = vst [vmem:[%s5137_s1 + $0x640] sm:$0xff] %v1412_v8  ;;  %1415 = vst [vmem:[%s5137_s1 + $0x648] sm:$0xff] %v1414_v9  ;;  %v1416_v10 = vld [vmem:[%s5136_s0 + $0x650] sm:$0xff]  ;;  %v1418_v11 = vld [vmem:[%s5136_s0 + $0x658] sm:$0xff] }
  0x68   :  { %v1420_v12 = vld [vmem:[%s5136_s0 + $0x660] sm:$0xff]  ;;  %1417 = vst [vmem:[%s5137_s1 + $0x650] sm:$0xff] %v1416_v10  ;;  %1419 = vst [vmem:[%s5137_s1 + $0x658] sm:$0xff] %v1418_v11  ;;  %v1422_v13 = vld [vmem:[%s5136_s0 + $0x668] sm:$0xff] }
  0x69   :  { %1421 = vst [vmem:[%s5137_s1 + $0x660] sm:$0xff] %v1420_v12  ;;  %v1424_v14 = vld [vmem:[%s5136_s0 + $0x670] sm:$0xff]  ;;  %v1426_v15 = vld [vmem:[%s5136_s0 + $0x678] sm:$0xff]  ;;  %1423 = vst [vmem:[%s5137_s1 + $0x668] sm:$0xff] %v1422_v13 }
  0x6a   :  { %1425 = vst [vmem:[%s5137_s1 + $0x670] sm:$0xff] %v1424_v14  ;;  %1427 = vst [vmem:[%s5137_s1 + $0x678] sm:$0xff] %v1426_v15  ;;  %v1428_v16 = vld [vmem:[%s5136_s0 + $0x680] sm:$0xff]  ;;  %v1430_v17 = vld [vmem:[%s5136_s0 + $0x688] sm:$0xff] }
  0x6b   :  { %v1432_v18 = vld [vmem:[%s5136_s0 + $0x690] sm:$0xff]  ;;  %1429 = vst [vmem:[%s5137_s1 + $0x680] sm:$0xff] %v1428_v16  ;;  %1431 = vst [vmem:[%s5137_s1 + $0x688] sm:$0xff] %v1430_v17  ;;  %v1434_v19 = vld [vmem:[%s5136_s0 + $0x698] sm:$0xff] }
  0x6c   :  { %1433 = vst [vmem:[%s5137_s1 + $0x690] sm:$0xff] %v1432_v18  ;;  %v1436_v20 = vld [vmem:[%s5136_s0 + $0x6a0] sm:$0xff]  ;;  %v1438_v21 = vld [vmem:[%s5136_s0 + $0x6a8] sm:$0xff]  ;;  %1435 = vst [vmem:[%s5137_s1 + $0x698] sm:$0xff] %v1434_v19 }
  0x6d   :  { %1437 = vst [vmem:[%s5137_s1 + $0x6a0] sm:$0xff] %v1436_v20  ;;  %1439 = vst [vmem:[%s5137_s1 + $0x6a8] sm:$0xff] %v1438_v21  ;;  %v1440_v22 = vld [vmem:[%s5136_s0 + $0x6b0] sm:$0xff]  ;;  %v1442_v23 = vld [vmem:[%s5136_s0 + $0x6b8] sm:$0xff] }
  0x6e   :  { %v1444_v24 = vld [vmem:[%s5136_s0 + $0x6c0] sm:$0xff]  ;;  %1441 = vst [vmem:[%s5137_s1 + $0x6b0] sm:$0xff] %v1440_v22  ;;  %1443 = vst [vmem:[%s5137_s1 + $0x6b8] sm:$0xff] %v1442_v23  ;;  %v1446_v25 = vld [vmem:[%s5136_s0 + $0x6c8] sm:$0xff] }
  0x6f   :  { %1445 = vst [vmem:[%s5137_s1 + $0x6c0] sm:$0xff] %v1444_v24  ;;  %v1448_v26 = vld [vmem:[%s5136_s0 + $0x6d0] sm:$0xff]  ;;  %v1450_v27 = vld [vmem:[%s5136_s0 + $0x6d8] sm:$0xff]  ;;  %1447 = vst [vmem:[%s5137_s1 + $0x6c8] sm:$0xff] %v1446_v25 }
  0x70   :  { %1449 = vst [vmem:[%s5137_s1 + $0x6d0] sm:$0xff] %v1448_v26  ;;  %1451 = vst [vmem:[%s5137_s1 + $0x6d8] sm:$0xff] %v1450_v27  ;;  %v1452_v28 = vld [vmem:[%s5136_s0 + $0x6e0] sm:$0xff]  ;;  %v1454_v29 = vld [vmem:[%s5136_s0 + $0x6e8] sm:$0xff] }
  0x71   :  { %v1456_v30 = vld [vmem:[%s5136_s0 + $0x6f0] sm:$0xff]  ;;  %1453 = vst [vmem:[%s5137_s1 + $0x6e0] sm:$0xff] %v1452_v28  ;;  %1455 = vst [vmem:[%s5137_s1 + $0x6e8] sm:$0xff] %v1454_v29  ;;  %v1458_v31 = vld [vmem:[%s5136_s0 + $0x6f8] sm:$0xff] }
  0x72   :  { %1457 = vst [vmem:[%s5137_s1 + $0x6f0] sm:$0xff] %v1456_v30  ;;  %v1460_v32 = vld [vmem:[%s5136_s0 + $0x700] sm:$0xff]  ;;  %v1462_v33 = vld [vmem:[%s5136_s0 + $0x708] sm:$0xff]  ;;  %1459 = vst [vmem:[%s5137_s1 + $0x6f8] sm:$0xff] %v1458_v31 }
  0x73   :  { %1461 = vst [vmem:[%s5137_s1 + $0x700] sm:$0xff] %v1460_v32  ;;  %1463 = vst [vmem:[%s5137_s1 + $0x708] sm:$0xff] %v1462_v33  ;;  %v1464_v34 = vld [vmem:[%s5136_s0 + $0x710] sm:$0xff]  ;;  %v1466_v35 = vld [vmem:[%s5136_s0 + $0x718] sm:$0xff] }
  0x74   :  { %v1468_v36 = vld [vmem:[%s5136_s0 + $0x720] sm:$0xff]  ;;  %1465 = vst [vmem:[%s5137_s1 + $0x710] sm:$0xff] %v1464_v34  ;;  %1467 = vst [vmem:[%s5137_s1 + $0x718] sm:$0xff] %v1466_v35  ;;  %v1470_v37 = vld [vmem:[%s5136_s0 + $0x728] sm:$0xff] }
  0x75   :  { %1469 = vst [vmem:[%s5137_s1 + $0x720] sm:$0xff] %v1468_v36  ;;  %v1472_v38 = vld [vmem:[%s5136_s0 + $0x730] sm:$0xff]  ;;  %v1474_v39 = vld [vmem:[%s5136_s0 + $0x738] sm:$0xff]  ;;  %1471 = vst [vmem:[%s5137_s1 + $0x728] sm:$0xff] %v1470_v37 }
  0x76   :  { %1473 = vst [vmem:[%s5137_s1 + $0x730] sm:$0xff] %v1472_v38  ;;  %1475 = vst [vmem:[%s5137_s1 + $0x738] sm:$0xff] %v1474_v39  ;;  %v1476_v40 = vld [vmem:[%s5136_s0 + $0x740] sm:$0xff]  ;;  %v1478_v41 = vld [vmem:[%s5136_s0 + $0x748] sm:$0xff] }
  0x77   :  { %v1480_v42 = vld [vmem:[%s5136_s0 + $0x750] sm:$0xff]  ;;  %1477 = vst [vmem:[%s5137_s1 + $0x740] sm:$0xff] %v1476_v40  ;;  %1479 = vst [vmem:[%s5137_s1 + $0x748] sm:$0xff] %v1478_v41  ;;  %v1482_v43 = vld [vmem:[%s5136_s0 + $0x758] sm:$0xff] }
  0x78   :  { %1481 = vst [vmem:[%s5137_s1 + $0x750] sm:$0xff] %v1480_v42  ;;  %v1484_v44 = vld [vmem:[%s5136_s0 + $0x760] sm:$0xff]  ;;  %v1486_v45 = vld [vmem:[%s5136_s0 + $0x768] sm:$0xff]  ;;  %1483 = vst [vmem:[%s5137_s1 + $0x758] sm:$0xff] %v1482_v43 }
  0x79   :  { %1485 = vst [vmem:[%s5137_s1 + $0x760] sm:$0xff] %v1484_v44  ;;  %1487 = vst [vmem:[%s5137_s1 + $0x768] sm:$0xff] %v1486_v45  ;;  %v1488_v46 = vld [vmem:[%s5136_s0 + $0x770] sm:$0xff]  ;;  %v1490_v47 = vld [vmem:[%s5136_s0 + $0x778] sm:$0xff] }
  0x7a   :  { %v1492_v48 = vld [vmem:[%s5136_s0 + $0x780] sm:$0xff]  ;;  %1489 = vst [vmem:[%s5137_s1 + $0x770] sm:$0xff] %v1488_v46  ;;  %1491 = vst [vmem:[%s5137_s1 + $0x778] sm:$0xff] %v1490_v47  ;;  %v1494_v49 = vld [vmem:[%s5136_s0 + $0x788] sm:$0xff] }
  0x7b   :  { %1493 = vst [vmem:[%s5137_s1 + $0x780] sm:$0xff] %v1492_v48  ;;  %v1496_v50 = vld [vmem:[%s5136_s0 + $0x790] sm:$0xff]  ;;  %v1498_v51 = vld [vmem:[%s5136_s0 + $0x798] sm:$0xff]  ;;  %1495 = vst [vmem:[%s5137_s1 + $0x788] sm:$0xff] %v1494_v49 }
  0x7c   :  { %1497 = vst [vmem:[%s5137_s1 + $0x790] sm:$0xff] %v1496_v50  ;;  %1499 = vst [vmem:[%s5137_s1 + $0x798] sm:$0xff] %v1498_v51  ;;  %v1500_v52 = vld [vmem:[%s5136_s0 + $0x7a0] sm:$0xff]  ;;  %v1502_v53 = vld [vmem:[%s5136_s0 + $0x7a8] sm:$0xff] }
  0x7d   :  { %v1504_v54 = vld [vmem:[%s5136_s0 + $0x7b0] sm:$0xff]  ;;  %1501 = vst [vmem:[%s5137_s1 + $0x7a0] sm:$0xff] %v1500_v52  ;;  %1503 = vst [vmem:[%s5137_s1 + $0x7a8] sm:$0xff] %v1502_v53  ;;  %v1506_v55 = vld [vmem:[%s5136_s0 + $0x7b8] sm:$0xff] }
  0x7e   :  { %1505 = vst [vmem:[%s5137_s1 + $0x7b0] sm:$0xff] %v1504_v54  ;;  %v1508_v56 = vld [vmem:[%s5136_s0 + $0x7c0] sm:$0xff]  ;;  %v1510_v57 = vld [vmem:[%s5136_s0 + $0x7c8] sm:$0xff]  ;;  %1507 = vst [vmem:[%s5137_s1 + $0x7b8] sm:$0xff] %v1506_v55 }
  0x7f   :  { %1509 = vst [vmem:[%s5137_s1 + $0x7c0] sm:$0xff] %v1508_v56  ;;  %1511 = vst [vmem:[%s5137_s1 + $0x7c8] sm:$0xff] %v1510_v57  ;;  %v1512_v58 = vld [vmem:[%s5136_s0 + $0x7d0] sm:$0xff]  ;;  %v1514_v59 = vld [vmem:[%s5136_s0 + $0x7d8] sm:$0xff] }
  0x80   :  { %v1516_v60 = vld [vmem:[%s5136_s0 + $0x7e0] sm:$0xff]  ;;  %1513 = vst [vmem:[%s5137_s1 + $0x7d0] sm:$0xff] %v1512_v58  ;;  %1515 = vst [vmem:[%s5137_s1 + $0x7d8] sm:$0xff] %v1514_v59  ;;  %v1518_v61 = vld [vmem:[%s5136_s0 + $0x7e8] sm:$0xff] }
  0x81   :  { %1517 = vst [vmem:[%s5137_s1 + $0x7e0] sm:$0xff] %v1516_v60  ;;  %v1520_v62 = vld [vmem:[%s5136_s0 + $0x7f0] sm:$0xff]  ;;  %v1522_v63 = vld [vmem:[%s5136_s0 + $0x7f8] sm:$0xff]  ;;  %1519 = vst [vmem:[%s5137_s1 + $0x7e8] sm:$0xff] %v1518_v61 }
  0x82   :  { %1521 = vst [vmem:[%s5137_s1 + $0x7f0] sm:$0xff] %v1520_v62  ;;  %1523 = vst [vmem:[%s5137_s1 + $0x7f8] sm:$0xff] %v1522_v63 }
  0x83   :  { %600 = vsyncadd [#allocation2 + $0x1], 16384  ;;  %v1526_v0 = vld [vmem:[%s5136_s0 + $0x800] sm:$0xff]  ;;  %v1528_v1 = vld [vmem:[%s5136_s0 + $0x808] sm:$0xff] }
  0x84   :  { %1527 = vst [vmem:[%s5137_s1 + $0x800] sm:$0xff] %v1526_v0  ;;  %1529 = vst [vmem:[%s5137_s1 + $0x808] sm:$0xff] %v1528_v1  ;;  %v1530_v2 = vld [vmem:[%s5136_s0 + $0x810] sm:$0xff]  ;;  %v1532_v3 = vld [vmem:[%s5136_s0 + $0x818] sm:$0xff] }
  0x85   :  { %v1534_v4 = vld [vmem:[%s5136_s0 + $0x820] sm:$0xff]  ;;  %1531 = vst [vmem:[%s5137_s1 + $0x810] sm:$0xff] %v1530_v2  ;;  %1533 = vst [vmem:[%s5137_s1 + $0x818] sm:$0xff] %v1532_v3  ;;  %v1536_v5 = vld [vmem:[%s5136_s0 + $0x828] sm:$0xff] }
  0x86   :  { %1535 = vst [vmem:[%s5137_s1 + $0x820] sm:$0xff] %v1534_v4  ;;  %v1538_v6 = vld [vmem:[%s5136_s0 + $0x830] sm:$0xff]  ;;  %v1540_v7 = vld [vmem:[%s5136_s0 + $0x838] sm:$0xff]  ;;  %1537 = vst [vmem:[%s5137_s1 + $0x828] sm:$0xff] %v1536_v5 }
  0x87   :  { %1539 = vst [vmem:[%s5137_s1 + $0x830] sm:$0xff] %v1538_v6  ;;  %1541 = vst [vmem:[%s5137_s1 + $0x838] sm:$0xff] %v1540_v7  ;;  %v1542_v8 = vld [vmem:[%s5136_s0 + $0x840] sm:$0xff]  ;;  %v1544_v9 = vld [vmem:[%s5136_s0 + $0x848] sm:$0xff] }
  0x88   :  { %v1546_v10 = vld [vmem:[%s5136_s0 + $0x850] sm:$0xff]  ;;  %1543 = vst [vmem:[%s5137_s1 + $0x840] sm:$0xff] %v1542_v8  ;;  %1545 = vst [vmem:[%s5137_s1 + $0x848] sm:$0xff] %v1544_v9  ;;  %v1548_v11 = vld [vmem:[%s5136_s0 + $0x858] sm:$0xff] }
  0x89   :  { %1547 = vst [vmem:[%s5137_s1 + $0x850] sm:$0xff] %v1546_v10  ;;  %v1550_v12 = vld [vmem:[%s5136_s0 + $0x860] sm:$0xff]  ;;  %v1552_v13 = vld [vmem:[%s5136_s0 + $0x868] sm:$0xff]  ;;  %1549 = vst [vmem:[%s5137_s1 + $0x858] sm:$0xff] %v1548_v11 }
  0x8a   :  { %1551 = vst [vmem:[%s5137_s1 + $0x860] sm:$0xff] %v1550_v12  ;;  %1553 = vst [vmem:[%s5137_s1 + $0x868] sm:$0xff] %v1552_v13  ;;  %v1554_v14 = vld [vmem:[%s5136_s0 + $0x870] sm:$0xff]  ;;  %v1556_v15 = vld [vmem:[%s5136_s0 + $0x878] sm:$0xff] }
  0x8b   :  { %v1558_v16 = vld [vmem:[%s5136_s0 + $0x880] sm:$0xff]  ;;  %1555 = vst [vmem:[%s5137_s1 + $0x870] sm:$0xff] %v1554_v14  ;;  %1557 = vst [vmem:[%s5137_s1 + $0x878] sm:$0xff] %v1556_v15  ;;  %v1560_v17 = vld [vmem:[%s5136_s0 + $0x888] sm:$0xff] }
  0x8c   :  { %1559 = vst [vmem:[%s5137_s1 + $0x880] sm:$0xff] %v1558_v16  ;;  %v1562_v18 = vld [vmem:[%s5136_s0 + $0x890] sm:$0xff]  ;;  %v1564_v19 = vld [vmem:[%s5136_s0 + $0x898] sm:$0xff]  ;;  %1561 = vst [vmem:[%s5137_s1 + $0x888] sm:$0xff] %v1560_v17 }
  0x8d   :  { %1563 = vst [vmem:[%s5137_s1 + $0x890] sm:$0xff] %v1562_v18  ;;  %1565 = vst [vmem:[%s5137_s1 + $0x898] sm:$0xff] %v1564_v19  ;;  %v1566_v20 = vld [vmem:[%s5136_s0 + $0x8a0] sm:$0xff]  ;;  %v1568_v21 = vld [vmem:[%s5136_s0 + $0x8a8] sm:$0xff] }
  0x8e   :  { %v1570_v22 = vld [vmem:[%s5136_s0 + $0x8b0] sm:$0xff]  ;;  %1567 = vst [vmem:[%s5137_s1 + $0x8a0] sm:$0xff] %v1566_v20  ;;  %1569 = vst [vmem:[%s5137_s1 + $0x8a8] sm:$0xff] %v1568_v21  ;;  %v1572_v23 = vld [vmem:[%s5136_s0 + $0x8b8] sm:$0xff] }
  0x8f   :  { %1571 = vst [vmem:[%s5137_s1 + $0x8b0] sm:$0xff] %v1570_v22  ;;  %v1574_v24 = vld [vmem:[%s5136_s0 + $0x8c0] sm:$0xff]  ;;  %v1576_v25 = vld [vmem:[%s5136_s0 + $0x8c8] sm:$0xff]  ;;  %1573 = vst [vmem:[%s5137_s1 + $0x8b8] sm:$0xff] %v1572_v23 }
  0x90   :  { %1575 = vst [vmem:[%s5137_s1 + $0x8c0] sm:$0xff] %v1574_v24  ;;  %1577 = vst [vmem:[%s5137_s1 + $0x8c8] sm:$0xff] %v1576_v25  ;;  %v1578_v26 = vld [vmem:[%s5136_s0 + $0x8d0] sm:$0xff]  ;;  %v1580_v27 = vld [vmem:[%s5136_s0 + $0x8d8] sm:$0xff] }
  0x91   :  { %v1582_v28 = vld [vmem:[%s5136_s0 + $0x8e0] sm:$0xff]  ;;  %1579 = vst [vmem:[%s5137_s1 + $0x8d0] sm:$0xff] %v1578_v26  ;;  %1581 = vst [vmem:[%s5137_s1 + $0x8d8] sm:$0xff] %v1580_v27  ;;  %v1584_v29 = vld [vmem:[%s5136_s0 + $0x8e8] sm:$0xff] }
  0x92   :  { %1583 = vst [vmem:[%s5137_s1 + $0x8e0] sm:$0xff] %v1582_v28  ;;  %v1586_v30 = vld [vmem:[%s5136_s0 + $0x8f0] sm:$0xff]  ;;  %v1588_v31 = vld [vmem:[%s5136_s0 + $0x8f8] sm:$0xff]  ;;  %1585 = vst [vmem:[%s5137_s1 + $0x8e8] sm:$0xff] %v1584_v29 }
  0x93   :  { %1587 = vst [vmem:[%s5137_s1 + $0x8f0] sm:$0xff] %v1586_v30  ;;  %1589 = vst [vmem:[%s5137_s1 + $0x8f8] sm:$0xff] %v1588_v31  ;;  %v1590_v32 = vld [vmem:[%s5136_s0 + $0x900] sm:$0xff]  ;;  %v1592_v33 = vld [vmem:[%s5136_s0 + $0x908] sm:$0xff] }
  0x94   :  { %v1594_v34 = vld [vmem:[%s5136_s0 + $0x910] sm:$0xff]  ;;  %1591 = vst [vmem:[%s5137_s1 + $0x900] sm:$0xff] %v1590_v32  ;;  %1593 = vst [vmem:[%s5137_s1 + $0x908] sm:$0xff] %v1592_v33  ;;  %v1596_v35 = vld [vmem:[%s5136_s0 + $0x918] sm:$0xff] }
  0x95   :  { %1595 = vst [vmem:[%s5137_s1 + $0x910] sm:$0xff] %v1594_v34  ;;  %v1598_v36 = vld [vmem:[%s5136_s0 + $0x920] sm:$0xff]  ;;  %v1600_v37 = vld [vmem:[%s5136_s0 + $0x928] sm:$0xff]  ;;  %1597 = vst [vmem:[%s5137_s1 + $0x918] sm:$0xff] %v1596_v35 }
  0x96   :  { %1599 = vst [vmem:[%s5137_s1 + $0x920] sm:$0xff] %v1598_v36  ;;  %1601 = vst [vmem:[%s5137_s1 + $0x928] sm:$0xff] %v1600_v37  ;;  %v1602_v38 = vld [vmem:[%s5136_s0 + $0x930] sm:$0xff]  ;;  %v1604_v39 = vld [vmem:[%s5136_s0 + $0x938] sm:$0xff] }
  0x97   :  { %v1606_v40 = vld [vmem:[%s5136_s0 + $0x940] sm:$0xff]  ;;  %1603 = vst [vmem:[%s5137_s1 + $0x930] sm:$0xff] %v1602_v38  ;;  %1605 = vst [vmem:[%s5137_s1 + $0x938] sm:$0xff] %v1604_v39  ;;  %v1608_v41 = vld [vmem:[%s5136_s0 + $0x948] sm:$0xff] }
  0x98   :  { %1607 = vst [vmem:[%s5137_s1 + $0x940] sm:$0xff] %v1606_v40  ;;  %v1610_v42 = vld [vmem:[%s5136_s0 + $0x950] sm:$0xff]  ;;  %v1612_v43 = vld [vmem:[%s5136_s0 + $0x958] sm:$0xff]  ;;  %1609 = vst [vmem:[%s5137_s1 + $0x948] sm:$0xff] %v1608_v41 }
  0x99   :  { %1611 = vst [vmem:[%s5137_s1 + $0x950] sm:$0xff] %v1610_v42  ;;  %1613 = vst [vmem:[%s5137_s1 + $0x958] sm:$0xff] %v1612_v43  ;;  %v1614_v44 = vld [vmem:[%s5136_s0 + $0x960] sm:$0xff]  ;;  %v1616_v45 = vld [vmem:[%s5136_s0 + $0x968] sm:$0xff] }
  0x9a   :  { %v1618_v46 = vld [vmem:[%s5136_s0 + $0x970] sm:$0xff]  ;;  %1615 = vst [vmem:[%s5137_s1 + $0x960] sm:$0xff] %v1614_v44  ;;  %1617 = vst [vmem:[%s5137_s1 + $0x968] sm:$0xff] %v1616_v45  ;;  %v1620_v47 = vld [vmem:[%s5136_s0 + $0x978] sm:$0xff] }
  0x9b   :  { %1619 = vst [vmem:[%s5137_s1 + $0x970] sm:$0xff] %v1618_v46  ;;  %v1622_v48 = vld [vmem:[%s5136_s0 + $0x980] sm:$0xff]  ;;  %v1624_v49 = vld [vmem:[%s5136_s0 + $0x988] sm:$0xff]  ;;  %1621 = vst [vmem:[%s5137_s1 + $0x978] sm:$0xff] %v1620_v47 }
  0x9c   :  { %1623 = vst [vmem:[%s5137_s1 + $0x980] sm:$0xff] %v1622_v48  ;;  %1625 = vst [vmem:[%s5137_s1 + $0x988] sm:$0xff] %v1624_v49  ;;  %v1626_v50 = vld [vmem:[%s5136_s0 + $0x990] sm:$0xff]  ;;  %v1628_v51 = vld [vmem:[%s5136_s0 + $0x998] sm:$0xff] }
  0x9d   :  { %v1630_v52 = vld [vmem:[%s5136_s0 + $0x9a0] sm:$0xff]  ;;  %1627 = vst [vmem:[%s5137_s1 + $0x990] sm:$0xff] %v1626_v50  ;;  %1629 = vst [vmem:[%s5137_s1 + $0x998] sm:$0xff] %v1628_v51  ;;  %v1632_v53 = vld [vmem:[%s5136_s0 + $0x9a8] sm:$0xff] }
  0x9e   :  { %1631 = vst [vmem:[%s5137_s1 + $0x9a0] sm:$0xff] %v1630_v52  ;;  %v1634_v54 = vld [vmem:[%s5136_s0 + $0x9b0] sm:$0xff]  ;;  %v1636_v55 = vld [vmem:[%s5136_s0 + $0x9b8] sm:$0xff]  ;;  %1633 = vst [vmem:[%s5137_s1 + $0x9a8] sm:$0xff] %v1632_v53 }
  0x9f   :  { %1635 = vst [vmem:[%s5137_s1 + $0x9b0] sm:$0xff] %v1634_v54  ;;  %1637 = vst [vmem:[%s5137_s1 + $0x9b8] sm:$0xff] %v1636_v55  ;;  %v1638_v56 = vld [vmem:[%s5136_s0 + $0x9c0] sm:$0xff]  ;;  %v1640_v57 = vld [vmem:[%s5136_s0 + $0x9c8] sm:$0xff] }
  0xa0   :  { %v1642_v58 = vld [vmem:[%s5136_s0 + $0x9d0] sm:$0xff]  ;;  %1639 = vst [vmem:[%s5137_s1 + $0x9c0] sm:$0xff] %v1638_v56  ;;  %1641 = vst [vmem:[%s5137_s1 + $0x9c8] sm:$0xff] %v1640_v57  ;;  %v1644_v59 = vld [vmem:[%s5136_s0 + $0x9d8] sm:$0xff] }
  0xa1   :  { %1643 = vst [vmem:[%s5137_s1 + $0x9d0] sm:$0xff] %v1642_v58  ;;  %v1646_v60 = vld [vmem:[%s5136_s0 + $0x9e0] sm:$0xff]  ;;  %v1648_v61 = vld [vmem:[%s5136_s0 + $0x9e8] sm:$0xff]  ;;  %1645 = vst [vmem:[%s5137_s1 + $0x9d8] sm:$0xff] %v1644_v59 }
  0xa2   :  { %1647 = vst [vmem:[%s5137_s1 + $0x9e0] sm:$0xff] %v1646_v60  ;;  %1649 = vst [vmem:[%s5137_s1 + $0x9e8] sm:$0xff] %v1648_v61  ;;  %v1650_v62 = vld [vmem:[%s5136_s0 + $0x9f0] sm:$0xff]  ;;  %v1652_v63 = vld [vmem:[%s5136_s0 + $0x9f8] sm:$0xff] }
  0xa3   :  { %v1654_v0 = vld [vmem:[%s5136_s0 + $0xa00] sm:$0xff]  ;;  %1651 = vst [vmem:[%s5137_s1 + $0x9f0] sm:$0xff] %v1650_v62  ;;  %1653 = vst [vmem:[%s5137_s1 + $0x9f8] sm:$0xff] %v1652_v63  ;;  %v1656_v1 = vld [vmem:[%s5136_s0 + $0xa08] sm:$0xff] }
  0xa4   :  { %1655 = vst [vmem:[%s5137_s1 + $0xa00] sm:$0xff] %v1654_v0  ;;  %v1658_v2 = vld [vmem:[%s5136_s0 + $0xa10] sm:$0xff]  ;;  %v1660_v3 = vld [vmem:[%s5136_s0 + $0xa18] sm:$0xff]  ;;  %1657 = vst [vmem:[%s5137_s1 + $0xa08] sm:$0xff] %v1656_v1 }
  0xa5   :  { %1659 = vst [vmem:[%s5137_s1 + $0xa10] sm:$0xff] %v1658_v2  ;;  %1661 = vst [vmem:[%s5137_s1 + $0xa18] sm:$0xff] %v1660_v3  ;;  %v1662_v4 = vld [vmem:[%s5136_s0 + $0xa20] sm:$0xff]  ;;  %v1664_v5 = vld [vmem:[%s5136_s0 + $0xa28] sm:$0xff] }
  0xa6   :  { %v1666_v6 = vld [vmem:[%s5136_s0 + $0xa30] sm:$0xff]  ;;  %1663 = vst [vmem:[%s5137_s1 + $0xa20] sm:$0xff] %v1662_v4  ;;  %1665 = vst [vmem:[%s5137_s1 + $0xa28] sm:$0xff] %v1664_v5  ;;  %v1668_v7 = vld [vmem:[%s5136_s0 + $0xa38] sm:$0xff] }
  0xa7   :  { %1667 = vst [vmem:[%s5137_s1 + $0xa30] sm:$0xff] %v1666_v6  ;;  %v1670_v8 = vld [vmem:[%s5136_s0 + $0xa40] sm:$0xff]  ;;  %v1672_v9 = vld [vmem:[%s5136_s0 + $0xa48] sm:$0xff]  ;;  %1669 = vst [vmem:[%s5137_s1 + $0xa38] sm:$0xff] %v1668_v7 }
  0xa8   :  { %1671 = vst [vmem:[%s5137_s1 + $0xa40] sm:$0xff] %v1670_v8  ;;  %1673 = vst [vmem:[%s5137_s1 + $0xa48] sm:$0xff] %v1672_v9  ;;  %v1674_v10 = vld [vmem:[%s5136_s0 + $0xa50] sm:$0xff]  ;;  %v1676_v11 = vld [vmem:[%s5136_s0 + $0xa58] sm:$0xff] }
  0xa9   :  { %v1678_v12 = vld [vmem:[%s5136_s0 + $0xa60] sm:$0xff]  ;;  %1675 = vst [vmem:[%s5137_s1 + $0xa50] sm:$0xff] %v1674_v10  ;;  %1677 = vst [vmem:[%s5137_s1 + $0xa58] sm:$0xff] %v1676_v11  ;;  %v1680_v13 = vld [vmem:[%s5136_s0 + $0xa68] sm:$0xff] }
  0xaa   :  { %1679 = vst [vmem:[%s5137_s1 + $0xa60] sm:$0xff] %v1678_v12  ;;  %v1682_v14 = vld [vmem:[%s5136_s0 + $0xa70] sm:$0xff]  ;;  %v1684_v15 = vld [vmem:[%s5136_s0 + $0xa78] sm:$0xff]  ;;  %1681 = vst [vmem:[%s5137_s1 + $0xa68] sm:$0xff] %v1680_v13 }
  0xab   :  { %1683 = vst [vmem:[%s5137_s1 + $0xa70] sm:$0xff] %v1682_v14  ;;  %1685 = vst [vmem:[%s5137_s1 + $0xa78] sm:$0xff] %v1684_v15  ;;  %v1686_v16 = vld [vmem:[%s5136_s0 + $0xa80] sm:$0xff]  ;;  %v1688_v17 = vld [vmem:[%s5136_s0 + $0xa88] sm:$0xff] }
  0xac   :  { %v1690_v18 = vld [vmem:[%s5136_s0 + $0xa90] sm:$0xff]  ;;  %1687 = vst [vmem:[%s5137_s1 + $0xa80] sm:$0xff] %v1686_v16  ;;  %1689 = vst [vmem:[%s5137_s1 + $0xa88] sm:$0xff] %v1688_v17  ;;  %v1692_v19 = vld [vmem:[%s5136_s0 + $0xa98] sm:$0xff] }
  0xad   :  { %1691 = vst [vmem:[%s5137_s1 + $0xa90] sm:$0xff] %v1690_v18  ;;  %v1694_v20 = vld [vmem:[%s5136_s0 + $0xaa0] sm:$0xff]  ;;  %v1696_v21 = vld [vmem:[%s5136_s0 + $0xaa8] sm:$0xff]  ;;  %1693 = vst [vmem:[%s5137_s1 + $0xa98] sm:$0xff] %v1692_v19 }
  0xae   :  { %1695 = vst [vmem:[%s5137_s1 + $0xaa0] sm:$0xff] %v1694_v20  ;;  %1697 = vst [vmem:[%s5137_s1 + $0xaa8] sm:$0xff] %v1696_v21  ;;  %v1698_v22 = vld [vmem:[%s5136_s0 + $0xab0] sm:$0xff]  ;;  %v1700_v23 = vld [vmem:[%s5136_s0 + $0xab8] sm:$0xff] }
  0xaf   :  { %v1702_v24 = vld [vmem:[%s5136_s0 + $0xac0] sm:$0xff]  ;;  %1699 = vst [vmem:[%s5137_s1 + $0xab0] sm:$0xff] %v1698_v22  ;;  %1701 = vst [vmem:[%s5137_s1 + $0xab8] sm:$0xff] %v1700_v23  ;;  %v1704_v25 = vld [vmem:[%s5136_s0 + $0xac8] sm:$0xff] }
  0xb0   :  { %1703 = vst [vmem:[%s5137_s1 + $0xac0] sm:$0xff] %v1702_v24  ;;  %v1706_v26 = vld [vmem:[%s5136_s0 + $0xad0] sm:$0xff]  ;;  %v1708_v27 = vld [vmem:[%s5136_s0 + $0xad8] sm:$0xff]  ;;  %1705 = vst [vmem:[%s5137_s1 + $0xac8] sm:$0xff] %v1704_v25 }
  0xb1   :  { %1707 = vst [vmem:[%s5137_s1 + $0xad0] sm:$0xff] %v1706_v26  ;;  %1709 = vst [vmem:[%s5137_s1 + $0xad8] sm:$0xff] %v1708_v27  ;;  %v1710_v28 = vld [vmem:[%s5136_s0 + $0xae0] sm:$0xff]  ;;  %v1712_v29 = vld [vmem:[%s5136_s0 + $0xae8] sm:$0xff] }
  0xb2   :  { %v1714_v30 = vld [vmem:[%s5136_s0 + $0xaf0] sm:$0xff]  ;;  %1711 = vst [vmem:[%s5137_s1 + $0xae0] sm:$0xff] %v1710_v28  ;;  %1713 = vst [vmem:[%s5137_s1 + $0xae8] sm:$0xff] %v1712_v29  ;;  %v1716_v31 = vld [vmem:[%s5136_s0 + $0xaf8] sm:$0xff] }
  0xb3   :  { %1715 = vst [vmem:[%s5137_s1 + $0xaf0] sm:$0xff] %v1714_v30  ;;  %v1718_v32 = vld [vmem:[%s5136_s0 + $0xb00] sm:$0xff]  ;;  %v1720_v33 = vld [vmem:[%s5136_s0 + $0xb08] sm:$0xff]  ;;  %1717 = vst [vmem:[%s5137_s1 + $0xaf8] sm:$0xff] %v1716_v31 }
  0xb4   :  { %1719 = vst [vmem:[%s5137_s1 + $0xb00] sm:$0xff] %v1718_v32  ;;  %1721 = vst [vmem:[%s5137_s1 + $0xb08] sm:$0xff] %v1720_v33  ;;  %v1722_v34 = vld [vmem:[%s5136_s0 + $0xb10] sm:$0xff]  ;;  %v1724_v35 = vld [vmem:[%s5136_s0 + $0xb18] sm:$0xff] }
  0xb5   :  { %v1726_v36 = vld [vmem:[%s5136_s0 + $0xb20] sm:$0xff]  ;;  %1723 = vst [vmem:[%s5137_s1 + $0xb10] sm:$0xff] %v1722_v34  ;;  %1725 = vst [vmem:[%s5137_s1 + $0xb18] sm:$0xff] %v1724_v35  ;;  %v1728_v37 = vld [vmem:[%s5136_s0 + $0xb28] sm:$0xff] }
  0xb6   :  { %1727 = vst [vmem:[%s5137_s1 + $0xb20] sm:$0xff] %v1726_v36  ;;  %v1730_v38 = vld [vmem:[%s5136_s0 + $0xb30] sm:$0xff]  ;;  %v1732_v39 = vld [vmem:[%s5136_s0 + $0xb38] sm:$0xff]  ;;  %1729 = vst [vmem:[%s5137_s1 + $0xb28] sm:$0xff] %v1728_v37 }
  0xb7   :  { %1731 = vst [vmem:[%s5137_s1 + $0xb30] sm:$0xff] %v1730_v38  ;;  %1733 = vst [vmem:[%s5137_s1 + $0xb38] sm:$0xff] %v1732_v39  ;;  %v1734_v40 = vld [vmem:[%s5136_s0 + $0xb40] sm:$0xff]  ;;  %v1736_v41 = vld [vmem:[%s5136_s0 + $0xb48] sm:$0xff] }
  0xb8   :  { %v1738_v42 = vld [vmem:[%s5136_s0 + $0xb50] sm:$0xff]  ;;  %1735 = vst [vmem:[%s5137_s1 + $0xb40] sm:$0xff] %v1734_v40  ;;  %1737 = vst [vmem:[%s5137_s1 + $0xb48] sm:$0xff] %v1736_v41  ;;  %v1740_v43 = vld [vmem:[%s5136_s0 + $0xb58] sm:$0xff] }
  0xb9   :  { %1739 = vst [vmem:[%s5137_s1 + $0xb50] sm:$0xff] %v1738_v42  ;;  %v1742_v44 = vld [vmem:[%s5136_s0 + $0xb60] sm:$0xff]  ;;  %v1744_v45 = vld [vmem:[%s5136_s0 + $0xb68] sm:$0xff]  ;;  %1741 = vst [vmem:[%s5137_s1 + $0xb58] sm:$0xff] %v1740_v43 }
  0xba   :  { %1743 = vst [vmem:[%s5137_s1 + $0xb60] sm:$0xff] %v1742_v44  ;;  %1745 = vst [vmem:[%s5137_s1 + $0xb68] sm:$0xff] %v1744_v45  ;;  %v1746_v46 = vld [vmem:[%s5136_s0 + $0xb70] sm:$0xff]  ;;  %v1748_v47 = vld [vmem:[%s5136_s0 + $0xb78] sm:$0xff] }
  0xbb   :  { %v1750_v48 = vld [vmem:[%s5136_s0 + $0xb80] sm:$0xff]  ;;  %1747 = vst [vmem:[%s5137_s1 + $0xb70] sm:$0xff] %v1746_v46  ;;  %1749 = vst [vmem:[%s5137_s1 + $0xb78] sm:$0xff] %v1748_v47  ;;  %v1752_v49 = vld [vmem:[%s5136_s0 + $0xb88] sm:$0xff] }
  0xbc   :  { %1751 = vst [vmem:[%s5137_s1 + $0xb80] sm:$0xff] %v1750_v48  ;;  %v1754_v50 = vld [vmem:[%s5136_s0 + $0xb90] sm:$0xff]  ;;  %v1756_v51 = vld [vmem:[%s5136_s0 + $0xb98] sm:$0xff]  ;;  %1753 = vst [vmem:[%s5137_s1 + $0xb88] sm:$0xff] %v1752_v49 }
  0xbd   :  { %1755 = vst [vmem:[%s5137_s1 + $0xb90] sm:$0xff] %v1754_v50  ;;  %1757 = vst [vmem:[%s5137_s1 + $0xb98] sm:$0xff] %v1756_v51  ;;  %v1758_v52 = vld [vmem:[%s5136_s0 + $0xba0] sm:$0xff]  ;;  %v1760_v53 = vld [vmem:[%s5136_s0 + $0xba8] sm:$0xff] }
  0xbe   :  { %v1762_v54 = vld [vmem:[%s5136_s0 + $0xbb0] sm:$0xff]  ;;  %1759 = vst [vmem:[%s5137_s1 + $0xba0] sm:$0xff] %v1758_v52  ;;  %1761 = vst [vmem:[%s5137_s1 + $0xba8] sm:$0xff] %v1760_v53  ;;  %v1764_v55 = vld [vmem:[%s5136_s0 + $0xbb8] sm:$0xff] }
  0xbf   :  { %1763 = vst [vmem:[%s5137_s1 + $0xbb0] sm:$0xff] %v1762_v54  ;;  %v1766_v56 = vld [vmem:[%s5136_s0 + $0xbc0] sm:$0xff]  ;;  %v1768_v57 = vld [vmem:[%s5136_s0 + $0xbc8] sm:$0xff]  ;;  %1765 = vst [vmem:[%s5137_s1 + $0xbb8] sm:$0xff] %v1764_v55 }
  0xc0   :  { %1767 = vst [vmem:[%s5137_s1 + $0xbc0] sm:$0xff] %v1766_v56  ;;  %1769 = vst [vmem:[%s5137_s1 + $0xbc8] sm:$0xff] %v1768_v57  ;;  %v1770_v58 = vld [vmem:[%s5136_s0 + $0xbd0] sm:$0xff]  ;;  %v1772_v59 = vld [vmem:[%s5136_s0 + $0xbd8] sm:$0xff] }
  0xc1   :  { %v1774_v60 = vld [vmem:[%s5136_s0 + $0xbe0] sm:$0xff]  ;;  %1771 = vst [vmem:[%s5137_s1 + $0xbd0] sm:$0xff] %v1770_v58  ;;  %1773 = vst [vmem:[%s5137_s1 + $0xbd8] sm:$0xff] %v1772_v59  ;;  %v1776_v61 = vld [vmem:[%s5136_s0 + $0xbe8] sm:$0xff] }
  0xc2   :  { %1775 = vst [vmem:[%s5137_s1 + $0xbe0] sm:$0xff] %v1774_v60  ;;  %v1778_v62 = vld [vmem:[%s5136_s0 + $0xbf0] sm:$0xff]  ;;  %v1780_v63 = vld [vmem:[%s5136_s0 + $0xbf8] sm:$0xff]  ;;  %1777 = vst [vmem:[%s5137_s1 + $0xbe8] sm:$0xff] %v1776_v61 }
  0xc3   :  { %1779 = vst [vmem:[%s5137_s1 + $0xbf0] sm:$0xff] %v1778_v62  ;;  %1781 = vst [vmem:[%s5137_s1 + $0xbf8] sm:$0xff] %v1780_v63 }
  0xc4   :  { %899 = vsyncadd [#allocation2 + $0x2], 16384  ;;  %v1784_v0 = vld [vmem:[%s5136_s0 + $0xc00] sm:$0xff]  ;;  %v1786_v1 = vld [vmem:[%s5136_s0 + $0xc08] sm:$0xff] }
  0xc5   :  { %1785 = vst [vmem:[%s5137_s1 + $0xc00] sm:$0xff] %v1784_v0  ;;  %1787 = vst [vmem:[%s5137_s1 + $0xc08] sm:$0xff] %v1786_v1  ;;  %v1788_v2 = vld [vmem:[%s5136_s0 + $0xc10] sm:$0xff]  ;;  %v1790_v3 = vld [vmem:[%s5136_s0 + $0xc18] sm:$0xff] }
  0xc6   :  { %v1792_v4 = vld [vmem:[%s5136_s0 + $0xc20] sm:$0xff]  ;;  %1789 = vst [vmem:[%s5137_s1 + $0xc10] sm:$0xff] %v1788_v2  ;;  %1791 = vst [vmem:[%s5137_s1 + $0xc18] sm:$0xff] %v1790_v3  ;;  %v1794_v5 = vld [vmem:[%s5136_s0 + $0xc28] sm:$0xff] }
  0xc7   :  { %1793 = vst [vmem:[%s5137_s1 + $0xc20] sm:$0xff] %v1792_v4  ;;  %v1796_v6 = vld [vmem:[%s5136_s0 + $0xc30] sm:$0xff]  ;;  %v1798_v7 = vld [vmem:[%s5136_s0 + $0xc38] sm:$0xff]  ;;  %1795 = vst [vmem:[%s5137_s1 + $0xc28] sm:$0xff] %v1794_v5 }
  0xc8   :  { %1797 = vst [vmem:[%s5137_s1 + $0xc30] sm:$0xff] %v1796_v6  ;;  %1799 = vst [vmem:[%s5137_s1 + $0xc38] sm:$0xff] %v1798_v7  ;;  %v1800_v8 = vld [vmem:[%s5136_s0 + $0xc40] sm:$0xff]  ;;  %v1802_v9 = vld [vmem:[%s5136_s0 + $0xc48] sm:$0xff] }
  0xc9   :  { %v1804_v10 = vld [vmem:[%s5136_s0 + $0xc50] sm:$0xff]  ;;  %1801 = vst [vmem:[%s5137_s1 + $0xc40] sm:$0xff] %v1800_v8  ;;  %1803 = vst [vmem:[%s5137_s1 + $0xc48] sm:$0xff] %v1802_v9  ;;  %v1806_v11 = vld [vmem:[%s5136_s0 + $0xc58] sm:$0xff] }
  0xca   :  { %1805 = vst [vmem:[%s5137_s1 + $0xc50] sm:$0xff] %v1804_v10  ;;  %v1808_v12 = vld [vmem:[%s5136_s0 + $0xc60] sm:$0xff]  ;;  %v1810_v13 = vld [vmem:[%s5136_s0 + $0xc68] sm:$0xff]  ;;  %1807 = vst [vmem:[%s5137_s1 + $0xc58] sm:$0xff] %v1806_v11 }
  0xcb   :  { %1809 = vst [vmem:[%s5137_s1 + $0xc60] sm:$0xff] %v1808_v12  ;;  %1811 = vst [vmem:[%s5137_s1 + $0xc68] sm:$0xff] %v1810_v13  ;;  %v1812_v14 = vld [vmem:[%s5136_s0 + $0xc70] sm:$0xff]  ;;  %v1814_v15 = vld [vmem:[%s5136_s0 + $0xc78] sm:$0xff] }
  0xcc   :  { %v1816_v16 = vld [vmem:[%s5136_s0 + $0xc80] sm:$0xff]  ;;  %1813 = vst [vmem:[%s5137_s1 + $0xc70] sm:$0xff] %v1812_v14  ;;  %1815 = vst [vmem:[%s5137_s1 + $0xc78] sm:$0xff] %v1814_v15  ;;  %v1818_v17 = vld [vmem:[%s5136_s0 + $0xc88] sm:$0xff] }
  0xcd   :  { %1817 = vst [vmem:[%s5137_s1 + $0xc80] sm:$0xff] %v1816_v16  ;;  %v1820_v18 = vld [vmem:[%s5136_s0 + $0xc90] sm:$0xff]  ;;  %v1822_v19 = vld [vmem:[%s5136_s0 + $0xc98] sm:$0xff]  ;;  %1819 = vst [vmem:[%s5137_s1 + $0xc88] sm:$0xff] %v1818_v17 }
  0xce   :  { %1821 = vst [vmem:[%s5137_s1 + $0xc90] sm:$0xff] %v1820_v18  ;;  %1823 = vst [vmem:[%s5137_s1 + $0xc98] sm:$0xff] %v1822_v19  ;;  %v1824_v20 = vld [vmem:[%s5136_s0 + $0xca0] sm:$0xff]  ;;  %v1826_v21 = vld [vmem:[%s5136_s0 + $0xca8] sm:$0xff] }
  0xcf   :  { %v1828_v22 = vld [vmem:[%s5136_s0 + $0xcb0] sm:$0xff]  ;;  %1825 = vst [vmem:[%s5137_s1 + $0xca0] sm:$0xff] %v1824_v20  ;;  %1827 = vst [vmem:[%s5137_s1 + $0xca8] sm:$0xff] %v1826_v21  ;;  %v1830_v23 = vld [vmem:[%s5136_s0 + $0xcb8] sm:$0xff] }
  0xd0   :  { %1829 = vst [vmem:[%s5137_s1 + $0xcb0] sm:$0xff] %v1828_v22  ;;  %v1832_v24 = vld [vmem:[%s5136_s0 + $0xcc0] sm:$0xff]  ;;  %v1834_v25 = vld [vmem:[%s5136_s0 + $0xcc8] sm:$0xff]  ;;  %1831 = vst [vmem:[%s5137_s1 + $0xcb8] sm:$0xff] %v1830_v23 }
  0xd1   :  { %1833 = vst [vmem:[%s5137_s1 + $0xcc0] sm:$0xff] %v1832_v24  ;;  %1835 = vst [vmem:[%s5137_s1 + $0xcc8] sm:$0xff] %v1834_v25  ;;  %v1836_v26 = vld [vmem:[%s5136_s0 + $0xcd0] sm:$0xff]  ;;  %v1838_v27 = vld [vmem:[%s5136_s0 + $0xcd8] sm:$0xff] }
  0xd2   :  { %v1840_v28 = vld [vmem:[%s5136_s0 + $0xce0] sm:$0xff]  ;;  %1837 = vst [vmem:[%s5137_s1 + $0xcd0] sm:$0xff] %v1836_v26  ;;  %1839 = vst [vmem:[%s5137_s1 + $0xcd8] sm:$0xff] %v1838_v27  ;;  %v1842_v29 = vld [vmem:[%s5136_s0 + $0xce8] sm:$0xff] }
  0xd3   :  { %1841 = vst [vmem:[%s5137_s1 + $0xce0] sm:$0xff] %v1840_v28  ;;  %v1844_v30 = vld [vmem:[%s5136_s0 + $0xcf0] sm:$0xff]  ;;  %v1846_v31 = vld [vmem:[%s5136_s0 + $0xcf8] sm:$0xff]  ;;  %1843 = vst [vmem:[%s5137_s1 + $0xce8] sm:$0xff] %v1842_v29 }
  0xd4   :  { %1845 = vst [vmem:[%s5137_s1 + $0xcf0] sm:$0xff] %v1844_v30  ;;  %1847 = vst [vmem:[%s5137_s1 + $0xcf8] sm:$0xff] %v1846_v31  ;;  %v1848_v32 = vld [vmem:[%s5136_s0 + $0xd00] sm:$0xff]  ;;  %v1850_v33 = vld [vmem:[%s5136_s0 + $0xd08] sm:$0xff] }
  0xd5   :  { %v1852_v34 = vld [vmem:[%s5136_s0 + $0xd10] sm:$0xff]  ;;  %1849 = vst [vmem:[%s5137_s1 + $0xd00] sm:$0xff] %v1848_v32  ;;  %1851 = vst [vmem:[%s5137_s1 + $0xd08] sm:$0xff] %v1850_v33  ;;  %v1854_v35 = vld [vmem:[%s5136_s0 + $0xd18] sm:$0xff] }
  0xd6   :  { %1853 = vst [vmem:[%s5137_s1 + $0xd10] sm:$0xff] %v1852_v34  ;;  %v1856_v36 = vld [vmem:[%s5136_s0 + $0xd20] sm:$0xff]  ;;  %v1858_v37 = vld [vmem:[%s5136_s0 + $0xd28] sm:$0xff]  ;;  %1855 = vst [vmem:[%s5137_s1 + $0xd18] sm:$0xff] %v1854_v35 }
  0xd7   :  { %1857 = vst [vmem:[%s5137_s1 + $0xd20] sm:$0xff] %v1856_v36  ;;  %1859 = vst [vmem:[%s5137_s1 + $0xd28] sm:$0xff] %v1858_v37  ;;  %v1860_v38 = vld [vmem:[%s5136_s0 + $0xd30] sm:$0xff]  ;;  %v1862_v39 = vld [vmem:[%s5136_s0 + $0xd38] sm:$0xff] }
  0xd8   :  { %v1864_v40 = vld [vmem:[%s5136_s0 + $0xd40] sm:$0xff]  ;;  %1861 = vst [vmem:[%s5137_s1 + $0xd30] sm:$0xff] %v1860_v38  ;;  %1863 = vst [vmem:[%s5137_s1 + $0xd38] sm:$0xff] %v1862_v39  ;;  %v1866_v41 = vld [vmem:[%s5136_s0 + $0xd48] sm:$0xff] }
  0xd9   :  { %1865 = vst [vmem:[%s5137_s1 + $0xd40] sm:$0xff] %v1864_v40  ;;  %v1868_v42 = vld [vmem:[%s5136_s0 + $0xd50] sm:$0xff]  ;;  %v1870_v43 = vld [vmem:[%s5136_s0 + $0xd58] sm:$0xff]  ;;  %1867 = vst [vmem:[%s5137_s1 + $0xd48] sm:$0xff] %v1866_v41 }
  0xda   :  { %1869 = vst [vmem:[%s5137_s1 + $0xd50] sm:$0xff] %v1868_v42  ;;  %1871 = vst [vmem:[%s5137_s1 + $0xd58] sm:$0xff] %v1870_v43  ;;  %v1872_v44 = vld [vmem:[%s5136_s0 + $0xd60] sm:$0xff]  ;;  %v1874_v45 = vld [vmem:[%s5136_s0 + $0xd68] sm:$0xff] }
  0xdb   :  { %v1876_v46 = vld [vmem:[%s5136_s0 + $0xd70] sm:$0xff]  ;;  %1873 = vst [vmem:[%s5137_s1 + $0xd60] sm:$0xff] %v1872_v44  ;;  %1875 = vst [vmem:[%s5137_s1 + $0xd68] sm:$0xff] %v1874_v45  ;;  %v1878_v47 = vld [vmem:[%s5136_s0 + $0xd78] sm:$0xff] }
  0xdc   :  { %1877 = vst [vmem:[%s5137_s1 + $0xd70] sm:$0xff] %v1876_v46  ;;  %v1880_v48 = vld [vmem:[%s5136_s0 + $0xd80] sm:$0xff]  ;;  %v1882_v49 = vld [vmem:[%s5136_s0 + $0xd88] sm:$0xff]  ;;  %1879 = vst [vmem:[%s5137_s1 + $0xd78] sm:$0xff] %v1878_v47 }
  0xdd   :  { %1881 = vst [vmem:[%s5137_s1 + $0xd80] sm:$0xff] %v1880_v48  ;;  %1883 = vst [vmem:[%s5137_s1 + $0xd88] sm:$0xff] %v1882_v49  ;;  %v1884_v50 = vld [vmem:[%s5136_s0 + $0xd90] sm:$0xff]  ;;  %v1886_v51 = vld [vmem:[%s5136_s0 + $0xd98] sm:$0xff] }
  0xde   :  { %v1888_v52 = vld [vmem:[%s5136_s0 + $0xda0] sm:$0xff]  ;;  %1885 = vst [vmem:[%s5137_s1 + $0xd90] sm:$0xff] %v1884_v50  ;;  %1887 = vst [vmem:[%s5137_s1 + $0xd98] sm:$0xff] %v1886_v51  ;;  %v1890_v53 = vld [vmem:[%s5136_s0 + $0xda8] sm:$0xff] }
  0xdf   :  { %1889 = vst [vmem:[%s5137_s1 + $0xda0] sm:$0xff] %v1888_v52  ;;  %v1892_v54 = vld [vmem:[%s5136_s0 + $0xdb0] sm:$0xff]  ;;  %v1894_v55 = vld [vmem:[%s5136_s0 + $0xdb8] sm:$0xff]  ;;  %1891 = vst [vmem:[%s5137_s1 + $0xda8] sm:$0xff] %v1890_v53 }
  0xe0   :  { %1893 = vst [vmem:[%s5137_s1 + $0xdb0] sm:$0xff] %v1892_v54  ;;  %1895 = vst [vmem:[%s5137_s1 + $0xdb8] sm:$0xff] %v1894_v55  ;;  %v1896_v56 = vld [vmem:[%s5136_s0 + $0xdc0] sm:$0xff]  ;;  %v1898_v57 = vld [vmem:[%s5136_s0 + $0xdc8] sm:$0xff] }
  0xe1   :  { %v1900_v58 = vld [vmem:[%s5136_s0 + $0xdd0] sm:$0xff]  ;;  %1897 = vst [vmem:[%s5137_s1 + $0xdc0] sm:$0xff] %v1896_v56  ;;  %1899 = vst [vmem:[%s5137_s1 + $0xdc8] sm:$0xff] %v1898_v57  ;;  %v1902_v59 = vld [vmem:[%s5136_s0 + $0xdd8] sm:$0xff] }
  0xe2   :  { %1901 = vst [vmem:[%s5137_s1 + $0xdd0] sm:$0xff] %v1900_v58  ;;  %v1904_v60 = vld [vmem:[%s5136_s0 + $0xde0] sm:$0xff]  ;;  %v1906_v61 = vld [vmem:[%s5136_s0 + $0xde8] sm:$0xff]  ;;  %1903 = vst [vmem:[%s5137_s1 + $0xdd8] sm:$0xff] %v1902_v59 }
  0xe3   :  { %1905 = vst [vmem:[%s5137_s1 + $0xde0] sm:$0xff] %v1904_v60  ;;  %1907 = vst [vmem:[%s5137_s1 + $0xde8] sm:$0xff] %v1906_v61  ;;  %v1908_v62 = vld [vmem:[%s5136_s0 + $0xdf0] sm:$0xff]  ;;  %v1910_v63 = vld [vmem:[%s5136_s0 + $0xdf8] sm:$0xff] }
  0xe4   :  { %v1912_v0 = vld [vmem:[%s5136_s0 + $0xe00] sm:$0xff]  ;;  %1909 = vst [vmem:[%s5137_s1 + $0xdf0] sm:$0xff] %v1908_v62  ;;  %1911 = vst [vmem:[%s5137_s1 + $0xdf8] sm:$0xff] %v1910_v63  ;;  %v1914_v1 = vld [vmem:[%s5136_s0 + $0xe08] sm:$0xff] }
  0xe5   :  { %1913 = vst [vmem:[%s5137_s1 + $0xe00] sm:$0xff] %v1912_v0  ;;  %v1916_v2 = vld [vmem:[%s5136_s0 + $0xe10] sm:$0xff]  ;;  %v1918_v3 = vld [vmem:[%s5136_s0 + $0xe18] sm:$0xff]  ;;  %1915 = vst [vmem:[%s5137_s1 + $0xe08] sm:$0xff] %v1914_v1 }
  0xe6   :  { %1917 = vst [vmem:[%s5137_s1 + $0xe10] sm:$0xff] %v1916_v2  ;;  %1919 = vst [vmem:[%s5137_s1 + $0xe18] sm:$0xff] %v1918_v3  ;;  %v1920_v4 = vld [vmem:[%s5136_s0 + $0xe20] sm:$0xff]  ;;  %v1922_v5 = vld [vmem:[%s5136_s0 + $0xe28] sm:$0xff] }
  0xe7   :  { %v1924_v6 = vld [vmem:[%s5136_s0 + $0xe30] sm:$0xff]  ;;  %1921 = vst [vmem:[%s5137_s1 + $0xe20] sm:$0xff] %v1920_v4  ;;  %1923 = vst [vmem:[%s5137_s1 + $0xe28] sm:$0xff] %v1922_v5  ;;  %v1926_v7 = vld [vmem:[%s5136_s0 + $0xe38] sm:$0xff] }
  0xe8   :  { %1925 = vst [vmem:[%s5137_s1 + $0xe30] sm:$0xff] %v1924_v6  ;;  %v1928_v8 = vld [vmem:[%s5136_s0 + $0xe40] sm:$0xff]  ;;  %v1930_v9 = vld [vmem:[%s5136_s0 + $0xe48] sm:$0xff]  ;;  %1927 = vst [vmem:[%s5137_s1 + $0xe38] sm:$0xff] %v1926_v7 }
  0xe9   :  { %1929 = vst [vmem:[%s5137_s1 + $0xe40] sm:$0xff] %v1928_v8  ;;  %1931 = vst [vmem:[%s5137_s1 + $0xe48] sm:$0xff] %v1930_v9  ;;  %v1932_v10 = vld [vmem:[%s5136_s0 + $0xe50] sm:$0xff]  ;;  %v1934_v11 = vld [vmem:[%s5136_s0 + $0xe58] sm:$0xff] }
  0xea   :  { %v1936_v12 = vld [vmem:[%s5136_s0 + $0xe60] sm:$0xff]  ;;  %1933 = vst [vmem:[%s5137_s1 + $0xe50] sm:$0xff] %v1932_v10  ;;  %1935 = vst [vmem:[%s5137_s1 + $0xe58] sm:$0xff] %v1934_v11  ;;  %v1938_v13 = vld [vmem:[%s5136_s0 + $0xe68] sm:$0xff] }
  0xeb   :  { %1937 = vst [vmem:[%s5137_s1 + $0xe60] sm:$0xff] %v1936_v12  ;;  %v1940_v14 = vld [vmem:[%s5136_s0 + $0xe70] sm:$0xff]  ;;  %v1942_v15 = vld [vmem:[%s5136_s0 + $0xe78] sm:$0xff]  ;;  %1939 = vst [vmem:[%s5137_s1 + $0xe68] sm:$0xff] %v1938_v13 }
  0xec   :  { %1941 = vst [vmem:[%s5137_s1 + $0xe70] sm:$0xff] %v1940_v14  ;;  %1943 = vst [vmem:[%s5137_s1 + $0xe78] sm:$0xff] %v1942_v15  ;;  %v1944_v16 = vld [vmem:[%s5136_s0 + $0xe80] sm:$0xff]  ;;  %v1946_v17 = vld [vmem:[%s5136_s0 + $0xe88] sm:$0xff] }
  0xed   :  { %v1948_v18 = vld [vmem:[%s5136_s0 + $0xe90] sm:$0xff]  ;;  %1945 = vst [vmem:[%s5137_s1 + $0xe80] sm:$0xff] %v1944_v16  ;;  %1947 = vst [vmem:[%s5137_s1 + $0xe88] sm:$0xff] %v1946_v17  ;;  %v1950_v19 = vld [vmem:[%s5136_s0 + $0xe98] sm:$0xff] }
  0xee   :  { %1949 = vst [vmem:[%s5137_s1 + $0xe90] sm:$0xff] %v1948_v18  ;;  %v1952_v20 = vld [vmem:[%s5136_s0 + $0xea0] sm:$0xff]  ;;  %v1954_v21 = vld [vmem:[%s5136_s0 + $0xea8] sm:$0xff]  ;;  %1951 = vst [vmem:[%s5137_s1 + $0xe98] sm:$0xff] %v1950_v19 }
  0xef   :  { %1953 = vst [vmem:[%s5137_s1 + $0xea0] sm:$0xff] %v1952_v20  ;;  %1955 = vst [vmem:[%s5137_s1 + $0xea8] sm:$0xff] %v1954_v21  ;;  %v1956_v22 = vld [vmem:[%s5136_s0 + $0xeb0] sm:$0xff]  ;;  %v1958_v23 = vld [vmem:[%s5136_s0 + $0xeb8] sm:$0xff] }
  0xf0   :  { %v1960_v24 = vld [vmem:[%s5136_s0 + $0xec0] sm:$0xff]  ;;  %1957 = vst [vmem:[%s5137_s1 + $0xeb0] sm:$0xff] %v1956_v22  ;;  %1959 = vst [vmem:[%s5137_s1 + $0xeb8] sm:$0xff] %v1958_v23  ;;  %v1962_v25 = vld [vmem:[%s5136_s0 + $0xec8] sm:$0xff] }
  0xf1   :  { %1961 = vst [vmem:[%s5137_s1 + $0xec0] sm:$0xff] %v1960_v24  ;;  %v1964_v26 = vld [vmem:[%s5136_s0 + $0xed0] sm:$0xff]  ;;  %v1966_v27 = vld [vmem:[%s5136_s0 + $0xed8] sm:$0xff]  ;;  %1963 = vst [vmem:[%s5137_s1 + $0xec8] sm:$0xff] %v1962_v25 }
  0xf2   :  { %1965 = vst [vmem:[%s5137_s1 + $0xed0] sm:$0xff] %v1964_v26  ;;  %1967 = vst [vmem:[%s5137_s1 + $0xed8] sm:$0xff] %v1966_v27  ;;  %v1968_v28 = vld [vmem:[%s5136_s0 + $0xee0] sm:$0xff]  ;;  %v1970_v29 = vld [vmem:[%s5136_s0 + $0xee8] sm:$0xff] }
  0xf3   :  { %v1972_v30 = vld [vmem:[%s5136_s0 + $0xef0] sm:$0xff]  ;;  %1969 = vst [vmem:[%s5137_s1 + $0xee0] sm:$0xff] %v1968_v28  ;;  %1971 = vst [vmem:[%s5137_s1 + $0xee8] sm:$0xff] %v1970_v29  ;;  %v1974_v31 = vld [vmem:[%s5136_s0 + $0xef8] sm:$0xff] }
  0xf4   :  { %1973 = vst [vmem:[%s5137_s1 + $0xef0] sm:$0xff] %v1972_v30  ;;  %v1976_v32 = vld [vmem:[%s5136_s0 + $0xf00] sm:$0xff]  ;;  %v1978_v33 = vld [vmem:[%s5136_s0 + $0xf08] sm:$0xff]  ;;  %1975 = vst [vmem:[%s5137_s1 + $0xef8] sm:$0xff] %v1974_v31 }
  0xf5   :  { %1977 = vst [vmem:[%s5137_s1 + $0xf00] sm:$0xff] %v1976_v32  ;;  %1979 = vst [vmem:[%s5137_s1 + $0xf08] sm:$0xff] %v1978_v33  ;;  %v1980_v34 = vld [vmem:[%s5136_s0 + $0xf10] sm:$0xff]  ;;  %v1982_v35 = vld [vmem:[%s5136_s0 + $0xf18] sm:$0xff] }
  0xf6   :  { %v1984_v36 = vld [vmem:[%s5136_s0 + $0xf20] sm:$0xff]  ;;  %1981 = vst [vmem:[%s5137_s1 + $0xf10] sm:$0xff] %v1980_v34  ;;  %1983 = vst [vmem:[%s5137_s1 + $0xf18] sm:$0xff] %v1982_v35  ;;  %v1986_v37 = vld [vmem:[%s5136_s0 + $0xf28] sm:$0xff] }
  0xf7   :  { %1985 = vst [vmem:[%s5137_s1 + $0xf20] sm:$0xff] %v1984_v36  ;;  %v1988_v38 = vld [vmem:[%s5136_s0 + $0xf30] sm:$0xff]  ;;  %v1990_v39 = vld [vmem:[%s5136_s0 + $0xf38] sm:$0xff]  ;;  %1987 = vst [vmem:[%s5137_s1 + $0xf28] sm:$0xff] %v1986_v37 }
  0xf8   :  { %1989 = vst [vmem:[%s5137_s1 + $0xf30] sm:$0xff] %v1988_v38  ;;  %1991 = vst [vmem:[%s5137_s1 + $0xf38] sm:$0xff] %v1990_v39  ;;  %v1992_v40 = vld [vmem:[%s5136_s0 + $0xf40] sm:$0xff]  ;;  %v1994_v41 = vld [vmem:[%s5136_s0 + $0xf48] sm:$0xff] }
  0xf9   :  { %v1996_v42 = vld [vmem:[%s5136_s0 + $0xf50] sm:$0xff]  ;;  %1993 = vst [vmem:[%s5137_s1 + $0xf40] sm:$0xff] %v1992_v40  ;;  %1995 = vst [vmem:[%s5137_s1 + $0xf48] sm:$0xff] %v1994_v41  ;;  %v1998_v43 = vld [vmem:[%s5136_s0 + $0xf58] sm:$0xff] }
  0xfa   :  { %1997 = vst [vmem:[%s5137_s1 + $0xf50] sm:$0xff] %v1996_v42  ;;  %v2000_v44 = vld [vmem:[%s5136_s0 + $0xf60] sm:$0xff]  ;;  %v2002_v45 = vld [vmem:[%s5136_s0 + $0xf68] sm:$0xff]  ;;  %1999 = vst [vmem:[%s5137_s1 + $0xf58] sm:$0xff] %v1998_v43 }
  0xfb   :  { %2001 = vst [vmem:[%s5137_s1 + $0xf60] sm:$0xff] %v2000_v44  ;;  %2003 = vst [vmem:[%s5137_s1 + $0xf68] sm:$0xff] %v2002_v45  ;;  %v2004_v46 = vld [vmem:[%s5136_s0 + $0xf70] sm:$0xff]  ;;  %v2006_v47 = vld [vmem:[%s5136_s0 + $0xf78] sm:$0xff] }
  0xfc   :  { %v2008_v48 = vld [vmem:[%s5136_s0 + $0xf80] sm:$0xff]  ;;  %2005 = vst [vmem:[%s5137_s1 + $0xf70] sm:$0xff] %v2004_v46  ;;  %2007 = vst [vmem:[%s5137_s1 + $0xf78] sm:$0xff] %v2006_v47  ;;  %v2010_v49 = vld [vmem:[%s5136_s0 + $0xf88] sm:$0xff] }
  0xfd   :  { %2009 = vst [vmem:[%s5137_s1 + $0xf80] sm:$0xff] %v2008_v48  ;;  %v2012_v50 = vld [vmem:[%s5136_s0 + $0xf90] sm:$0xff]  ;;  %v2014_v51 = vld [vmem:[%s5136_s0 + $0xf98] sm:$0xff]  ;;  %2011 = vst [vmem:[%s5137_s1 + $0xf88] sm:$0xff] %v2010_v49 }
  0xfe   :  { %2013 = vst [vmem:[%s5137_s1 + $0xf90] sm:$0xff] %v2012_v50  ;;  %2015 = vst [vmem:[%s5137_s1 + $0xf98] sm:$0xff] %v2014_v51  ;;  %v2016_v52 = vld [vmem:[%s5136_s0 + $0xfa0] sm:$0xff]  ;;  %v2018_v53 = vld [vmem:[%s5136_s0 + $0xfa8] sm:$0xff] }
  0xff   :  { %v2020_v54 = vld [vmem:[%s5136_s0 + $0xfb0] sm:$0xff]  ;;  %2017 = vst [vmem:[%s5137_s1 + $0xfa0] sm:$0xff] %v2016_v52  ;;  %2019 = vst [vmem:[%s5137_s1 + $0xfa8] sm:$0xff] %v2018_v53  ;;  %v2022_v55 = vld [vmem:[%s5136_s0 + $0xfb8] sm:$0xff] }
 0x100   :  { %2021 = vst [vmem:[%s5137_s1 + $0xfb0] sm:$0xff] %v2020_v54  ;;  %v2024_v56 = vld [vmem:[%s5136_s0 + $0xfc0] sm:$0xff]  ;;  %v2026_v57 = vld [vmem:[%s5136_s0 + $0xfc8] sm:$0xff]  ;;  %2023 = vst [vmem:[%s5137_s1 + $0xfb8] sm:$0xff] %v2022_v55 }
 0x101   :  { %2025 = vst [vmem:[%s5137_s1 + $0xfc0] sm:$0xff] %v2024_v56  ;;  %2027 = vst [vmem:[%s5137_s1 + $0xfc8] sm:$0xff] %v2026_v57  ;;  %v2028_v58 = vld [vmem:[%s5136_s0 + $0xfd0] sm:$0xff]  ;;  %v2030_v59 = vld [vmem:[%s5136_s0 + $0xfd8] sm:$0xff] }
 0x102   :  { %v2032_v60 = vld [vmem:[%s5136_s0 + $0xfe0] sm:$0xff]  ;;  %2029 = vst [vmem:[%s5137_s1 + $0xfd0] sm:$0xff] %v2028_v58  ;;  %2031 = vst [vmem:[%s5137_s1 + $0xfd8] sm:$0xff] %v2030_v59  ;;  %v2034_v61 = vld [vmem:[%s5136_s0 + $0xfe8] sm:$0xff] }
 0x103   :  { %2033 = vst [vmem:[%s5137_s1 + $0xfe0] sm:$0xff] %v2032_v60  ;;  %v2036_v62 = vld [vmem:[%s5136_s0 + $0xff0] sm:$0xff]  ;;  %v2038_v63 = vld [vmem:[%s5136_s0 + $0xff8] sm:$0xff]  ;;  %2035 = vst [vmem:[%s5137_s1 + $0xfe8] sm:$0xff] %v2034_v61 }
 0x104   :  { %2037 = vst [vmem:[%s5137_s1 + $0xff0] sm:$0xff] %v2036_v62  ;;  %2039 = vst [vmem:[%s5137_s1 + $0xff8] sm:$0xff] %v2038_v63 }
 0x105   :  { %1198 = vsyncadd [#allocation2 + $0x3], 16384 }
 0x106   :  { %2046 = dma.done.wait [#allocation2], 16384 }
 0x107   :  { %2047 = vsyncadd [#allocation2], 4294950912 }
 0x108   :  { %2048 = dma.done.wait [#allocation2 + $0x1], 16384 }
 0x109   :  { %2049 = vsyncadd [#allocation2 + $0x1], 4294950912 }
 0x10a   :  { %2050 = dma.done.wait [#allocation2 + $0x2], 16384 }
 0x10b   :  { %2051 = vsyncadd [#allocation2 + $0x2], 4294950912 }
 0x10c   :  { %2052 = dma.done.wait [#allocation2 + $0x3], 16384 }
 0x10d   :  { %2053 = vsyncadd [#allocation2 + $0x3], 4294950912 }
 0x10e   :  { %1209 = vsyncmov [#allocation2] }
 0x111   :  { %s1210_s0 = vpop.sfrf %1209 }
 0x112   :  { %p2042_p0 = scmp.ne.s32.totalorder %s1210_s0, 0 }
 0x114   :  { %1214 = shalt.err (%p2042_p0)  }
 0x115   :  { %1216 = vsyncmov [#allocation2 + $0x1] }
 0x118   :  { %s1217_s24 = vpop.sfrf %1216 }
 0x119   :  { %p2043_p1 = scmp.ne.s32.totalorder %s1217_s24, 0 }
 0x11b   :  { %1221 = shalt.err (%p2043_p1)  }
 0x11c   :  { %1223 = vsyncmov [#allocation2 + $0x2] }
 0x11f   :  { %s1224_s25 = vpop.sfrf %1223 }
 0x120   :  { %p2044_p2 = scmp.ne.s32.totalorder %s1224_s25, 0 }
 0x122   :  { %1228 = shalt.err (%p2044_p2)  }
 0x123   :  { %1230 = vsyncmov [#allocation2 + $0x3] }
 0x126   :  { %s1231_s1 = vpop.sfrf %1230 }
 0x127   :  { %p2045_p3 = scmp.ne.s32.totalorder %s1231_s1, 0 }
 0x129   :  { %1235 = shalt.err (%p2045_p3)  }

</bundles_post_ra>
